<compile_context>
chip_gen: v5e
topology: v5e:2x2
jax: 0.10.0
libtpu: 0.0.40
codegen_flags: <defaults>
</compile_context>

<pallas_src>
import jax
import jax.numpy as jnp
from jax import lax
from jax.experimental import pallas as pl
from jax.experimental.pallas import tpu as pltpu

EPS = 1e-5
LANE = 128


def _round_up(x, m):
    return ((x + m - 1) // m) * m


def _fold_bn(gamma, beta, mean, var, eps=EPS):
    scale = gamma / jnp.sqrt(var + eps)
    bias = beta - mean * scale
    return scale.astype(jnp.float32), bias.astype(jnp.float32)


def _pad2(m, rows, cols, dtype):
    r, c = m.shape
    return jnp.zeros((rows, cols), dtype).at[:r, :c].set(m.astype(dtype))


def _pad_vec(v, n):
    return jnp.zeros((1, n), jnp.float32).at[0, : v.shape[0]].set(v.astype(jnp.float32))


# ----------------------------------------------------------------------------
# Fully fused bottleneck forward (downsample=None, groups=1, stride=1 path)
# ----------------------------------------------------------------------------
def bottleneck_forward(x_nchw, params, stride=1, dilation=1, groups=1):
    # BatchNorm is applied in inference mode (running stats).
    # TODO(synk): an arbitrary `downsample` nn.Module has no generic Pallas
    # translation; only the downsample=None configuration is implemented.
    if stride != 1:
        raise NotImplementedError(
            "downsample=None requires stride==1 for the residual add")
    if groups != 1:
        raise NotImplementedError("grouped 3x3 conv not implemented")

    N, Cin, H, W = x_nchw.shape
    w1 = params["conv1_w"]            # (width, Cin, 1, 1)
    w2 = params["conv2_w"]            # (width, width, 3, 3)
    w3 = params["conv3_w"]            # (Cout, width, 1, 1)
    width = w1.shape[0]
    Cout = w3.shape[0]
    if Cin != Cout:
        raise NotImplementedError(
            "downsample=None requires Cin == planes*expansion for the residual add")

    cin_p = _round_up(Cin, LANE)
    wd_p = _round_up(width, LANE)
    cout_p = _round_up(Cout, LANE)
    assert cin_p == cout_p            # padded residual add (holds since Cin == Cout)
    d = int(dilation)
    HW = H * W

    # --- host-side prep: fold BN, pad channels to lane width, cast to bf16 ---
    # (NHWC + channel padding keeps the 128-wide channel axis on lanes; the
    #  NCHW<->NHWC conversion is a single cheap boundary pass.)
    x = jnp.transpose(x_nchw, (0, 2, 3, 1)).reshape(N, HW, Cin)
    x = jnp.pad(x, ((0, 0), (0, 0), (0, cin_p - Cin))).astype(jnp.bfloat16)

    s1, b1 = _fold_bn(params["bn1_gamma"], params["bn1_beta"],
                      params["bn1_mean"], params["bn1_var"])
    s2, b2 = _fold_bn(params["bn2_gamma"], params["bn2_beta"],
                      params["bn2_mean"], params["bn2_var"])
    s3, b3 = _fold_bn(params["bn3_gamma"], params["bn3_beta"],
                      params["bn3_mean"], params["bn3_var"])

    w1_p = _pad2(jnp.transpose(w1[:, :, 0, 0], (1, 0)), cin_p, wd_p, jnp.bfloat16)
    w2_taps = jnp.transpose(w2, (2, 3, 1, 0)).reshape(9, width, width)  # (tap,cin,cout)
    w2_p = (jnp.zeros((9, wd_p, wd_p), jnp.bfloat16)
            .at[:, :width, :width].set(w2_taps.astype(jnp.bfloat16)))
    w3_p = _pad2(jnp.transpose(w3[:, :, 0, 0], (1, 0)), wd_p, cout_p, jnp.bfloat16)
    s1_p, b1_p = _pad_vec(s1, wd_p), _pad_vec(b1, wd_p)
    s2_p, b2_p = _pad_vec(s2, wd_p), _pad_vec(b2, wd_p)
    s3_p, b3_p = _pad_vec(s3, cout_p), _pad_vec(b3, cout_p)

    # --- VMEM budget (per grid step; blocks double-buffered by the pipeline) ---
    vmem_bytes = (
        2 * HW * cin_p * 2                                            # x block (bf16)
        + 2 * HW * cout_p * 4                                         # out block (f32)
        + 2 * (cin_p * wd_p + 9 * wd_p * wd_p + wd_p * cout_p) * 2    # weights (bf16)
        + (H + 2 * d) * (W + 2 * d) * wd_p * 4                        # padded scratch
        + 6 * HW * max(wd_p, cout_p) * 4)                             # live f32 temps
    if vmem_bytes > 40 * 2**20:
        raise NotImplementedError(
            "per-image working set exceeds VMEM budget; spatial tiling needed")
    vmem_limit = int(min(max(2 * vmem_bytes, 16 * 2**20), 48 * 2**20))

    # --- fused kernel: conv1 -> conv2(3x3, 9 taps) -> conv3 + residual -------
    def kernel(x_ref, w1_ref, s1_ref, b1_ref, w2_ref, s2_ref, b2_ref,
               w3_ref, s3_ref, b3_ref, o_ref, h1_ref):
        # conv1 (1x1) + bn1 + relu
        x2d = x_ref[0]                                         # (HW, cin_p) bf16
        a1 = jnp.dot(x2d, w1_ref[...], preferred_element_type=jnp.float32)
        a1 = jnp.maximum(a1 * s1_ref[...] + b1_ref[...], 0.0)

        # stage conv1 output into a spatially zero-padded VMEM scratch so the
        # 3x3 taps are plain static slices (no HBM im2col materialization).
        h1_ref[...] = jnp.zeros_like(h1_ref)
        h1_ref[d:d + H, d:d + W, :] = a1.reshape(H, W, wd_p)
        h1p = h1_ref[...]                                      # (H+2d, W+2d, wd_p) f32

        # conv2 (3x3, stride 1, dilation d) + bn2 + relu — 9-tap MXU reduction
        acc = jnp.zeros((HW, wd_p), jnp.float32)
        for ky in range(3):
            for kx in range(3):
                tap = h1p[ky * d:ky * d + H, kx * d:kx * d + W, :]
                tap = tap.reshape(HW, wd_p).astype(jnp.bfloat16)
                acc = acc + jnp.dot(tap, w2_ref[ky * 3 + kx],
                                    preferred_element_type=jnp.float32)
        a2 = jnp.maximum(acc * s2_ref[...] + b2_ref[...], 0.0)

        # conv3 (1x1) + bn3 + residual add + relu
        a3 = jnp.dot(a2.astype(jnp.bfloat16), w3_ref[...],
                     preferred_element_type=jnp.float32)
        a3 = a3 * s3_ref[...] + b3_ref[...] + x2d.astype(jnp.float32)
        o_ref[0] = jnp.maximum(a3, 0.0).astype(o_ref.dtype)

    out_p = pl.pallas_call(
        kernel,
        out_shape=jax.ShapeDtypeStruct((N, HW, cout_p), jnp.float32),
        grid_spec=pltpu.PrefetchScalarGridSpec(
            num_scalar_prefetch=0,
            grid=(N,),
            in_specs=[
                pl.BlockSpec((1, HW, cin_p), lambda b: (b, 0, 0)),     # x (per image)
                pl.BlockSpec((cin_p, wd_p), lambda b: (0, 0)),         # w1
                pl.BlockSpec((1, wd_p), lambda b: (0, 0)),             # bn1 scale
                pl.BlockSpec((1, wd_p), lambda b: (0, 0)),             # bn1 bias
                pl.BlockSpec((9, wd_p, wd_p), lambda b: (0, 0, 0)),    # w2 (9 taps)
                pl.BlockSpec((1, wd_p), lambda b: (0, 0)),             # bn2 scale
                pl.BlockSpec((1, wd_p), lambda b: (0, 0)),             # bn2 bias
                pl.BlockSpec((wd_p, cout_p), lambda b: (0, 0)),        # w3
                pl.BlockSpec((1, cout_p), lambda b: (0, 0)),           # bn3 scale
                pl.BlockSpec((1, cout_p), lambda b: (0, 0)),           # bn3 bias
            ],
            out_specs=pl.BlockSpec((1, HW, cout_p), lambda b: (b, 0, 0)),
            scratch_shapes=[
                pltpu.VMEM((H + 2 * d, W + 2 * d, wd_p), jnp.float32)],
        ),
        compiler_params=pltpu.CompilerParams(
            dimension_semantics=("parallel",),
            vmem_limit_bytes=vmem_limit),
    )(x, w1_p, s1_p, b1_p, w2_p, s2_p, b2_p, w3_p, s3_p, b3_p)

    out = out_p[..., :Cout].reshape(N, H, W, Cout)
    return jnp.transpose(out, (0, 3, 1, 2))                    # NHWC -> NCHW


# ----------------------------------------------------------------------------
# Pure-JAX reference (lax.conv) for correctness checking
# ----------------------------------------------------------------------------
def bottleneck_ref(x, params, stride=1, dilation=1, eps=EPS):
    def conv(x, w, stride=1, dilation=1, padding=0):
        return lax.conv_general_dilated(
            x, w, (stride, stride), [(padding, padding)] * 2,
            rhs_dilation=(dilation, dilation),
            dimension_numbers=("NCHW", "OIHW", "NCHW"))

    def bn(x, g, b, m, v):
        return ((x - m[None, :, None, None]) /
                jnp.sqrt(v[None, :, None, None] + eps) *
                g[None, :, None, None] + b[None, :, None, None])

    identity = x
    out = jax.nn.relu(bn(conv(x, params["conv1_w"]),
                         params["bn1_gamma"], params["bn1_beta"],
                         params["bn1_mean"], params["bn1_var"]))
    out = jax.nn.relu(bn(conv(out, params["conv2_w"], stride, dilation,
                              padding=dilation),
                         params["bn2_gamma"], params["bn2_beta"],
                         params["bn2_mean"], params["bn2_var"]))
    out = bn(conv(out, params["conv3_w"]),
             params["bn3_gamma"], params["bn3_beta"],
             params["bn3_mean"], params["bn3_var"])
    return jax.nn.relu(out + identity)


def make_params(key, inplanes, planes, groups=1, base_width=64, expansion=4):
    width = int(planes * (base_width / 64.0)) * groups
    cout = planes * expansion
    ks = jax.random.split(key, 15)

    def bn_params(k0, k1, k2, k3, c):
        return (0.5 + jax.random.uniform(k0, (c,)),            # gamma
                0.1 * jax.random.normal(k1, (c,)),              # beta
                0.1 * jax.random.normal(k2, (c,)),              # running_mean
                0.5 + jax.random.uniform(k3, (c,)))             # running_var

    g1, b1, m1, v1 = bn_params(ks[3], ks[4], ks[5], ks[6], width)
    g2, b2, m2, v2 = bn_params(ks[7], ks[8], ks[9], ks[10], width)
    g3, b3, m3, v3 = bn_params(ks[11], ks[12], ks[13], ks[14], cout)
    return {
        "conv1_w": 0.1 * jax.random.normal(ks[0], (width, inplanes, 1, 1)),
        "conv2_w": 0.1 * jax.random.normal(ks[1], (width, width // groups, 3, 3)),
        "conv3_w": 0.1 * jax.random.normal(ks[2], (cout, width, 1, 1)),
        "bn1_gamma": g1, "bn1_beta": b1, "bn1_mean": m1, "bn1_var": v1,
        "bn2_gamma": g2, "bn2_beta": b2, "bn2_mean": m2, "bn2_var": v2,
        "bn3_gamma": g3, "bn3_beta": b3, "bn3_mean": m3, "bn3_var": v3,
    }


if __name__ == "__main__":
    key = jax.random.PRNGKey(0)
    k_x, k_p = jax.random.split(key)

    # BottleneckAdjusted(inplanes=16, planes=4, stride=1, downsample=None)
    #   -> width=4, out_channels = planes*4 = 16 == inplanes (residual valid)
    N, inplanes, H, W = 2, 16, 8, 8
    planes, stride, dilation = 4, 1, 1

    x = jax.random.normal(k_x, (N, inplanes, H, W), dtype=jnp.float32)
    params = make_params(k_p, inplanes, planes)

    out = jax.block_until_ready(
        bottleneck_forward(x, params, stride=stride, dilation=dilation))

    # Reference uses bf16-rounded inputs/conv-weights (the kernel quantizes at
    # the boundary) but keeps f32 math, so the comparison isolates kernel bugs.
    def bf16_round(a):
        return a.astype(jnp.bfloat16).astype(jnp.float32)

    ref_params = dict(params)
    for name in ("conv1_w", "conv2_w", "conv3_w"):
        ref_params[name] = bf16_round(params[name])
    ref = jax.block_until_ready(
        bottleneck_ref(bf16_round(x), ref_params, stride=stride, dilation=dilation))

    assert out.shape == ref.shape == (N, planes * 4, H, W)
    max_err = float(jnp.max(jnp.abs(out - ref)))
    assert jnp.allclose(out, ref, rtol=2e-2, atol=2e-2), max_err
    print("KERNEL_OK")
</pallas_src>

<mosaic_0001>
module attributes {stable_mosaic.version = 11 : i64} {
  func.func @kernel(%arg0: i32, %arg1: memref<1x64x128xbf16, #tpu.memory_space<vmem>>, %arg2: memref<128x128xbf16, #tpu.memory_space<vmem>>, %arg3: memref<1x128xf32, #tpu.memory_space<vmem>>, %arg4: memref<1x128xf32, #tpu.memory_space<vmem>>, %arg5: memref<9x128x128xbf16, #tpu.memory_space<vmem>>, %arg6: memref<1x128xf32, #tpu.memory_space<vmem>>, %arg7: memref<1x128xf32, #tpu.memory_space<vmem>>, %arg8: memref<128x128xbf16, #tpu.memory_space<vmem>>, %arg9: memref<1x128xf32, #tpu.memory_space<vmem>>, %arg10: memref<1x128xf32, #tpu.memory_space<vmem>>, %arg11: memref<1x64x128xf32, #tpu.memory_space<vmem>>, %arg12: memref<10x10x128xf32, #tpu.memory_space<vmem>>) attributes {dimension_semantics = [#tpu.dimension_semantics<parallel>], iteration_bounds = array<i64: 2>, scalar_prefetch = 0 : i64, scratch_operands = 1 : i64, tpu.core_type = #tpu.core_type<tc>, window_params = [{transform_indices = @transform_0, window_bounds = array<i64: 1, 64, 128>}, {pipeline_mode = #tpu.pipeline_mode<synchronous>, transform_indices = @transform_1, window_bounds = array<i64: 128, 128>}, {pipeline_mode = #tpu.pipeline_mode<synchronous>, transform_indices = @transform_2, window_bounds = array<i64: 1, 128>}, {pipeline_mode = #tpu.pipeline_mode<synchronous>, transform_indices = @transform_3, window_bounds = array<i64: 1, 128>}, {pipeline_mode = #tpu.pipeline_mode<synchronous>, transform_indices = @transform_4, window_bounds = array<i64: 9, 128, 128>}, {pipeline_mode = #tpu.pipeline_mode<synchronous>, transform_indices = @transform_5, window_bounds = array<i64: 1, 128>}, {pipeline_mode = #tpu.pipeline_mode<synchronous>, transform_indices = @transform_6, window_bounds = array<i64: 1, 128>}, {pipeline_mode = #tpu.pipeline_mode<synchronous>, transform_indices = @transform_7, window_bounds = array<i64: 128, 128>}, {pipeline_mode = #tpu.pipeline_mode<synchronous>, transform_indices = @transform_8, window_bounds = array<i64: 1, 128>}, {pipeline_mode = #tpu.pipeline_mode<synchronous>, transform_indices = @transform_9, window_bounds = array<i64: 1, 128>}, {transform_indices = @transform_10, window_bounds = array<i64: 1, 64, 128>}]} {
    %c0 = arith.constant 0 : index
    %c0_0 = arith.constant 0 : index
    %c0_1 = arith.constant 0 : index
    %0 = vector.load %arg1[%c0, %c0_0, %c0_1] : memref<1x64x128xbf16, #tpu.memory_space<vmem>>, vector<1x64x128xbf16>
    %1 = vector.shape_cast %0 : vector<1x64x128xbf16> to vector<64x128xbf16>
    %c0_2 = arith.constant 0 : index
    %c0_3 = arith.constant 0 : index
    %2 = vector.load %arg2[%c0_2, %c0_3] : memref<128x128xbf16, #tpu.memory_space<vmem>>, vector<128x128xbf16>
    %cst = arith.constant dense<0.000000e+00> : vector<64x128xf32>
    %3 = tpu.matmul %1, %2, %cst {dimension_numbers = #tpu.dot_dimension_numbers<[1], [0], [0], [1], [0, 0, 1, 1], [], []>} : vector<64x128xbf16>, vector<128x128xbf16>, vector<64x128xf32> -> vector<64x128xf32>
    %c0_4 = arith.constant 0 : index
    %c0_5 = arith.constant 0 : index
    %4 = vector.load %arg3[%c0_4, %c0_5] : memref<1x128xf32, #tpu.memory_space<vmem>>, vector<1x128xf32>
    %5 = vector.broadcast %4 : vector<1x128xf32> to vector<64x128xf32>
    %6 = arith.mulf %3, %5 : vector<64x128xf32>
    %c0_6 = arith.constant 0 : index
    %c0_7 = arith.constant 0 : index
    %7 = vector.load %arg4[%c0_6, %c0_7] : memref<1x128xf32, #tpu.memory_space<vmem>>, vector<1x128xf32>
    %8 = vector.broadcast %7 : vector<1x128xf32> to vector<64x128xf32>
    %9 = arith.addf %6, %8 : vector<64x128xf32>
    %cst_8 = arith.constant 0.000000e+00 : f32
    %10 = vector.broadcast %cst_8 : f32 to vector<64x128xf32>
    %11 = arith.maximumf %9, %10 : vector<64x128xf32>
    %cst_9 = arith.constant 0.000000e+00 : f32
    %12 = vector.broadcast %cst_9 : f32 to vector<10x10x128xf32>
    %c0_10 = arith.constant 0 : index
    %c0_11 = arith.constant 0 : index
    %c0_12 = arith.constant 0 : index
    %13 = vector.load %arg12[%c0_10, %c0_11, %c0_12] : memref<10x10x128xf32, #tpu.memory_space<vmem>>, vector<10x10x128xf32>
    tpu.vector_store %arg12[%c0_10, %c0_11, %c0_12], %12 {strides = array<i32>} : memref<10x10x128xf32, #tpu.memory_space<vmem>>, vector<10x10x128xf32>,
    %14 = vector.shape_cast %11 : vector<64x128xf32> to vector<8x8x128xf32>
    %c1 = arith.constant 1 : index
    %c1_13 = arith.constant 1 : index
    %c0_14 = arith.constant 0 : index
    %15 = vector.load %arg12[%c1, %c1_13, %c0_14] : memref<10x10x128xf32, #tpu.memory_space<vmem>>, vector<8x8x128xf32>
    tpu.vector_store %arg12[%c1, %c1_13, %c0_14], %14 {strides = array<i32>} : memref<10x10x128xf32, #tpu.memory_space<vmem>>, vector<8x8x128xf32>,
    %c0_15 = arith.constant 0 : index
    %c0_16 = arith.constant 0 : index
    %c0_17 = arith.constant 0 : index
    %16 = vector.load %arg12[%c0_15, %c0_16, %c0_17] : memref<10x10x128xf32, #tpu.memory_space<vmem>>, vector<10x10x128xf32>
    %cst_18 = arith.constant 0.000000e+00 : f32
    %17 = vector.broadcast %cst_18 : f32 to vector<64x128xf32>
    %18 = vector.extract_strided_slice %16 {offsets = [0, 0, 0], sizes = [8, 8, 128], strides = [1, 1, 1]} : vector<10x10x128xf32> to vector<8x8x128xf32>
    %19 = vector.shape_cast %18 : vector<8x8x128xf32> to vector<64x128xf32>
    %20 = arith.truncf %19 : vector<64x128xf32> to vector<64x128xbf16>
    %c0_19 = arith.constant 0 : index
    %c0_20 = arith.constant 0 : index
    %c0_21 = arith.constant 0 : index
    %21 = vector.load %arg5[%c0_19, %c0_20, %c0_21] : memref<9x128x128xbf16, #tpu.memory_space<vmem>>, vector<1x128x128xbf16>
    %22 = vector.shape_cast %21 : vector<1x128x128xbf16> to vector<128x128xbf16>
    %cst_22 = arith.constant dense<0.000000e+00> : vector<64x128xf32>
    %23 = tpu.matmul %20, %22, %cst_22 {dimension_numbers = #tpu.dot_dimension_numbers<[1], [0], [0], [1], [0, 0, 1, 1], [], []>} : vector<64x128xbf16>, vector<128x128xbf16>, vector<64x128xf32> -> vector<64x128xf32>
    %24 = arith.addf %17, %23 : vector<64x128xf32>
    %25 = vector.extract_strided_slice %16 {offsets = [0, 1, 0], sizes = [8, 8, 128], strides = [1, 1, 1]} : vector<10x10x128xf32> to vector<8x8x128xf32>
    %26 = vector.shape_cast %25 : vector<8x8x128xf32> to vector<64x128xf32>
    %27 = arith.truncf %26 : vector<64x128xf32> to vector<64x128xbf16>
    %c1_23 = arith.constant 1 : index
    %c0_24 = arith.constant 0 : index
    %c0_25 = arith.constant 0 : index
    %28 = vector.load %arg5[%c1_23, %c0_24, %c0_25] : memref<9x128x128xbf16, #tpu.memory_space<vmem>>, vector<1x128x128xbf16>
    %29 = vector.shape_cast %28 : vector<1x128x128xbf16> to vector<128x128xbf16>
    %cst_26 = arith.constant dense<0.000000e+00> : vector<64x128xf32>
    %30 = tpu.matmul %27, %29, %cst_26 {dimension_numbers = #tpu.dot_dimension_numbers<[1], [0], [0], [1], [0, 0, 1, 1], [], []>} : vector<64x128xbf16>, vector<128x128xbf16>, vector<64x128xf32> -> vector<64x128xf32>
    %31 = arith.addf %24, %30 : vector<64x128xf32>
    %32 = vector.extract_strided_slice %16 {offsets = [0, 2, 0], sizes = [8, 8, 128], strides = [1, 1, 1]} : vector<10x10x128xf32> to vector<8x8x128xf32>
    %33 = vector.shape_cast %32 : vector<8x8x128xf32> to vector<64x128xf32>
    %34 = arith.truncf %33 : vector<64x128xf32> to vector<64x128xbf16>
    %c2 = arith.constant 2 : index
    %c0_27 = arith.constant 0 : index
    %c0_28 = arith.constant 0 : index
    %35 = vector.load %arg5[%c2, %c0_27, %c0_28] : memref<9x128x128xbf16, #tpu.memory_space<vmem>>, vector<1x128x128xbf16>
    %36 = vector.shape_cast %35 : vector<1x128x128xbf16> to vector<128x128xbf16>
    %cst_29 = arith.constant dense<0.000000e+00> : vector<64x128xf32>
    %37 = tpu.matmul %34, %36, %cst_29 {dimension_numbers = #tpu.dot_dimension_numbers<[1], [0], [0], [1], [0, 0, 1, 1], [], []>} : vector<64x128xbf16>, vector<128x128xbf16>, vector<64x128xf32> -> vector<64x128xf32>
    %38 = arith.addf %31, %37 : vector<64x128xf32>
    %39 = vector.extract_strided_slice %16 {offsets = [1, 0, 0], sizes = [8, 8, 128], strides = [1, 1, 1]} : vector<10x10x128xf32> to vector<8x8x128xf32>
    %40 = vector.shape_cast %39 : vector<8x8x128xf32> to vector<64x128xf32>
    %41 = arith.truncf %40 : vector<64x128xf32> to vector<64x128xbf16>
    %c3 = arith.constant 3 : index
    %c0_30 = arith.constant 0 : index
    %c0_31 = arith.constant 0 : index
    %42 = vector.load %arg5[%c3, %c0_30, %c0_31] : memref<9x128x128xbf16, #tpu.memory_space<vmem>>, vector<1x128x128xbf16>
    %43 = vector.shape_cast %42 : vector<1x128x128xbf16> to vector<128x128xbf16>
    %cst_32 = arith.constant dense<0.000000e+00> : vector<64x128xf32>
    %44 = tpu.matmul %41, %43, %cst_32 {dimension_numbers = #tpu.dot_dimension_numbers<[1], [0], [0], [1], [0, 0, 1, 1], [], []>} : vector<64x128xbf16>, vector<128x128xbf16>, vector<64x128xf32> -> vector<64x128xf32>
    %45 = arith.addf %38, %44 : vector<64x128xf32>
    %46 = vector.extract_strided_slice %16 {offsets = [1, 1, 0], sizes = [8, 8, 128], strides = [1, 1, 1]} : vector<10x10x128xf32> to vector<8x8x128xf32>
    %47 = vector.shape_cast %46 : vector<8x8x128xf32> to vector<64x128xf32>
    %48 = arith.truncf %47 : vector<64x128xf32> to vector<64x128xbf16>
    %c4 = arith.constant 4 : index
    %c0_33 = arith.constant 0 : index
    %c0_34 = arith.constant 0 : index
    %49 = vector.load %arg5[%c4, %c0_33, %c0_34] : memref<9x128x128xbf16, #tpu.memory_space<vmem>>, vector<1x128x128xbf16>
    %50 = vector.shape_cast %49 : vector<1x128x128xbf16> to vector<128x128xbf16>
    %cst_35 = arith.constant dense<0.000000e+00> : vector<64x128xf32>
    %51 = tpu.matmul %48, %50, %cst_35 {dimension_numbers = #tpu.dot_dimension_numbers<[1], [0], [0], [1], [0, 0, 1, 1], [], []>} : vector<64x128xbf16>, vector<128x128xbf16>, vector<64x128xf32> -> vector<64x128xf32>
    %52 = arith.addf %45, %51 : vector<64x128xf32>
    %53 = vector.extract_strided_slice %16 {offsets = [1, 2, 0], sizes = [8, 8, 128], strides = [1, 1, 1]} : vector<10x10x128xf32> to vector<8x8x128xf32>
    %54 = vector.shape_cast %53 : vector<8x8x128xf32> to vector<64x128xf32>
    %55 = arith.truncf %54 : vector<64x128xf32> to vector<64x128xbf16>
    %c5 = arith.constant 5 : index
    %c0_36 = arith.constant 0 : index
    %c0_37 = arith.constant 0 : index
    %56 = vector.load %arg5[%c5, %c0_36, %c0_37] : memref<9x128x128xbf16, #tpu.memory_space<vmem>>, vector<1x128x128xbf16>
    %57 = vector.shape_cast %56 : vector<1x128x128xbf16> to vector<128x128xbf16>
    %cst_38 = arith.constant dense<0.000000e+00> : vector<64x128xf32>
    %58 = tpu.matmul %55, %57, %cst_38 {dimension_numbers = #tpu.dot_dimension_numbers<[1], [0], [0], [1], [0, 0, 1, 1], [], []>} : vector<64x128xbf16>, vector<128x128xbf16>, vector<64x128xf32> -> vector<64x128xf32>
    %59 = arith.addf %52, %58 : vector<64x128xf32>
    %60 = vector.extract_strided_slice %16 {offsets = [2, 0, 0], sizes = [8, 8, 128], strides = [1, 1, 1]} : vector<10x10x128xf32> to vector<8x8x128xf32>
    %61 = vector.shape_cast %60 : vector<8x8x128xf32> to vector<64x128xf32>
    %62 = arith.truncf %61 : vector<64x128xf32> to vector<64x128xbf16>
    %c6 = arith.constant 6 : index
    %c0_39 = arith.constant 0 : index
    %c0_40 = arith.constant 0 : index
    %63 = vector.load %arg5[%c6, %c0_39, %c0_40] : memref<9x128x128xbf16, #tpu.memory_space<vmem>>, vector<1x128x128xbf16>
    %64 = vector.shape_cast %63 : vector<1x128x128xbf16> to vector<128x128xbf16>
    %cst_41 = arith.constant dense<0.000000e+00> : vector<64x128xf32>
    %65 = tpu.matmul %62, %64, %cst_41 {dimension_numbers = #tpu.dot_dimension_numbers<[1], [0], [0], [1], [0, 0, 1, 1], [], []>} : vector<64x128xbf16>, vector<128x128xbf16>, vector<64x128xf32> -> vector<64x128xf32>
    %66 = arith.addf %59, %65 : vector<64x128xf32>
    %67 = vector.extract_strided_slice %16 {offsets = [2, 1, 0], sizes = [8, 8, 128], strides = [1, 1, 1]} : vector<10x10x128xf32> to vector<8x8x128xf32>
    %68 = vector.shape_cast %67 : vector<8x8x128xf32> to vector<64x128xf32>
    %69 = arith.truncf %68 : vector<64x128xf32> to vector<64x128xbf16>
    %c7 = arith.constant 7 : index
    %c0_42 = arith.constant 0 : index
    %c0_43 = arith.constant 0 : index
    %70 = vector.load %arg5[%c7, %c0_42, %c0_43] : memref<9x128x128xbf16, #tpu.memory_space<vmem>>, vector<1x128x128xbf16>
    %71 = vector.shape_cast %70 : vector<1x128x128xbf16> to vector<128x128xbf16>
    %cst_44 = arith.constant dense<0.000000e+00> : vector<64x128xf32>
    %72 = tpu.matmul %69, %71, %cst_44 {dimension_numbers = #tpu.dot_dimension_numbers<[1], [0], [0], [1], [0, 0, 1, 1], [], []>} : vector<64x128xbf16>, vector<128x128xbf16>, vector<64x128xf32> -> vector<64x128xf32>
    %73 = arith.addf %66, %72 : vector<64x128xf32>
    %74 = vector.extract_strided_slice %16 {offsets = [2, 2, 0], sizes = [8, 8, 128], strides = [1, 1, 1]} : vector<10x10x128xf32> to vector<8x8x128xf32>
    %75 = vector.shape_cast %74 : vector<8x8x128xf32> to vector<64x128xf32>
    %76 = arith.truncf %75 : vector<64x128xf32> to vector<64x128xbf16>
    %c8 = arith.constant 8 : index
    %c0_45 = arith.constant 0 : index
    %c0_46 = arith.constant 0 : index
    %77 = vector.load %arg5[%c8, %c0_45, %c0_46] : memref<9x128x128xbf16, #tpu.memory_space<vmem>>, vector<1x128x128xbf16>
    %78 = vector.shape_cast %77 : vector<1x128x128xbf16> to vector<128x128xbf16>
    %cst_47 = arith.constant dense<0.000000e+00> : vector<64x128xf32>
    %79 = tpu.matmul %76, %78, %cst_47 {dimension_numbers = #tpu.dot_dimension_numbers<[1], [0], [0], [1], [0, 0, 1, 1], [], []>} : vector<64x128xbf16>, vector<128x128xbf16>, vector<64x128xf32> -> vector<64x128xf32>
    %80 = arith.addf %73, %79 : vector<64x128xf32>
    %c0_48 = arith.constant 0 : index
    %c0_49 = arith.constant 0 : index
    %81 = vector.load %arg6[%c0_48, %c0_49] : memref<1x128xf32, #tpu.memory_space<vmem>>, vector<1x128xf32>
    %82 = vector.broadcast %81 : vector<1x128xf32> to vector<64x128xf32>
    %83 = arith.mulf %80, %82 : vector<64x128xf32>
    %c0_50 = arith.constant 0 : index
    %c0_51 = arith.constant 0 : index
    %84 = vector.load %arg7[%c0_50, %c0_51] : memref<1x128xf32, #tpu.memory_space<vmem>>, vector<1x128xf32>
    %85 = vector.broadcast %84 : vector<1x128xf32> to vector<64x128xf32>
    %86 = arith.addf %83, %85 : vector<64x128xf32>
    %cst_52 = arith.constant 0.000000e+00 : f32
    %87 = vector.broadcast %cst_52 : f32 to vector<64x128xf32>
    %88 = arith.maximumf %86, %87 : vector<64x128xf32>
    %89 = arith.truncf %88 : vector<64x128xf32> to vector<64x128xbf16>
    %c0_53 = arith.constant 0 : index
    %c0_54 = arith.constant 0 : index
    %90 = vector.load %arg8[%c0_53, %c0_54] : memref<128x128xbf16, #tpu.memory_space<vmem>>, vector<128x128xbf16>
    %cst_55 = arith.constant dense<0.000000e+00> : vector<64x128xf32>
    %91 = tpu.matmul %89, %90, %cst_55 {dimension_numbers = #tpu.dot_dimension_numbers<[1], [0], [0], [1], [0, 0, 1, 1], [], []>} : vector<64x128xbf16>, vector<128x128xbf16>, vector<64x128xf32> -> vector<64x128xf32>
    %c0_56 = arith.constant 0 : index
    %c0_57 = arith.constant 0 : index
    %92 = vector.load %arg9[%c0_56, %c0_57] : memref<1x128xf32, #tpu.memory_space<vmem>>, vector<1x128xf32>
    %93 = vector.broadcast %92 : vector<1x128xf32> to vector<64x128xf32>
    %94 = arith.mulf %91, %93 : vector<64x128xf32>
    %c0_58 = arith.constant 0 : index
    %c0_59 = arith.constant 0 : index
    %95 = vector.load %arg10[%c0_58, %c0_59] : memref<1x128xf32, #tpu.memory_space<vmem>>, vector<1x128xf32>
    %96 = vector.broadcast %95 : vector<1x128xf32> to vector<64x128xf32>
    %97 = arith.addf %94, %96 : vector<64x128xf32>
    %98 = arith.extf %1 : vector<64x128xbf16> to vector<64x128xf32>
    %99 = arith.addf %97, %98 : vector<64x128xf32>
    %cst_60 = arith.constant 0.000000e+00 : f32
    %100 = vector.broadcast %cst_60 : f32 to vector<64x128xf32>
    %101 = arith.maximumf %99, %100 : vector<64x128xf32>
    %c0_61 = arith.constant 0 : index
    %c0_62 = arith.constant 0 : index
    %c0_63 = arith.constant 0 : index
    %102 = vector.load %arg11[%c0_61, %c0_62, %c0_63] : memref<1x64x128xf32, #tpu.memory_space<vmem>>, vector<1x64x128xf32>
    %103 = vector.shape_cast %102 : vector<1x64x128xf32> to vector<64x128xf32>
    %104 = vector.shape_cast %101 : vector<64x128xf32> to vector<1x64x128xf32>
    tpu.vector_store %arg11[%c0_61, %c0_62, %c0_63], %104 {strides = array<i32>} : memref<1x64x128xf32, #tpu.memory_space<vmem>>, vector<1x64x128xf32>,
    return
  }
  func.func @transform_0(%arg0: i32) -> (i32, i32, i32) {
    %c0_i32 = arith.constant 0 : i32
    %c0_i32_0 = arith.constant 0 : i32
    %c0_i32_1 = arith.constant 0 : i32
    return %arg0, %c0_i32, %c0_i32_0 : i32, i32, i32
  }
  func.func @transform_1(%arg0: i32) -> (i32, i32) {
    %c0_i32 = arith.constant 0 : i32
    %c0_i32_0 = arith.constant 0 : i32
    %c0_i32_1 = arith.constant 0 : i32
    return %c0_i32, %c0_i32_0 : i32, i32
  }
  func.func @transform_2(%arg0: i32) -> (i32, i32) {
    %c0_i32 = arith.constant 0 : i32
    %c0_i32_0 = arith.constant 0 : i32
    %c0_i32_1 = arith.constant 0 : i32
    return %c0_i32, %c0_i32_0 : i32, i32
  }
  func.func @transform_3(%arg0: i32) -> (i32, i32) {
    %c0_i32 = arith.constant 0 : i32
    %c0_i32_0 = arith.constant 0 : i32
    %c0_i32_1 = arith.constant 0 : i32
    return %c0_i32, %c0_i32_0 : i32, i32
  }
  func.func @transform_4(%arg0: i32) -> (i32, i32, i32) {
    %c0_i32 = arith.constant 0 : i32
    %c0_i32_0 = arith.constant 0 : i32
    %c0_i32_1 = arith.constant 0 : i32
    %c0_i32_2 = arith.constant 0 : i32
    return %c0_i32, %c0_i32_0, %c0_i32_1 : i32, i32, i32
  }
  func.func @transform_5(%arg0: i32) -> (i32, i32) {
    %c0_i32 = arith.constant 0 : i32
    %c0_i32_0 = arith.constant 0 : i32
    %c0_i32_1 = arith.constant 0 : i32
    return %c0_i32, %c0_i32_0 : i32, i32
  }
  func.func @transform_6(%arg0: i32) -> (i32, i32) {
    %c0_i32 = arith.constant 0 : i32
    %c0_i32_0 = arith.constant 0 : i32
    %c0_i32_1 = arith.constant 0 : i32
    return %c0_i32, %c0_i32_0 : i32, i32
  }
  func.func @transform_7(%arg0: i32) -> (i32, i32) {
    %c0_i32 = arith.constant 0 : i32
    %c0_i32_0 = arith.constant 0 : i32
    %c0_i32_1 = arith.constant 0 : i32
    return %c0_i32, %c0_i32_0 : i32, i32
  }
  func.func @transform_8(%arg0: i32) -> (i32, i32) {
    %c0_i32 = arith.constant 0 : i32
    %c0_i32_0 = arith.constant 0 : i32
    %c0_i32_1 = arith.constant 0 : i32
    return %c0_i32, %c0_i32_0 : i32, i32
  }
  func.func @transform_9(%arg0: i32) -> (i32, i32) {
    %c0_i32 = arith.constant 0 : i32
    %c0_i32_0 = arith.constant 0 : i32
    %c0_i32_1 = arith.constant 0 : i32
    return %c0_i32, %c0_i32_0 : i32, i32
  }
  func.func @transform_10(%arg0: i32) -> (i32, i32, i32) {
    %c0_i32 = arith.constant 0 : i32
    %c0_i32_0 = arith.constant 0 : i32
    %c0_i32_1 = arith.constant 0 : i32
    return %arg0, %c0_i32, %c0_i32_0 : i32, i32, i32
  }
}

</mosaic_0001>

<bundles_post_ra>
// kernel: tpu_custom_call.1
= control target key start
LH: loop header
LB: loop body
LE: loop exit
PB: predicated region body
PF: predicated region fallthrough
CT: control target
= control target key end

     0   :  { %s3238_s0 = inlined_call_operand.hbm [shape: bf16[2,64,128], index: 0, kind: input, shape index: {}]   ;;  %s3239_s1 = inlined_call_operand.hbm [shape: bf16[128,128], index: 1, kind: input, shape index: {}]   ;;  %s3240_s2 = inlined_call_operand.vmem [shape: f32[1,128], index: 2, kind: input, shape index: {}]   ;;  %s3241_s3 = inlined_call_operand.vmem [shape: f32[1,128], index: 3, kind: input, shape index: {}]   ;;  %s3242_s4 = inlined_call_operand.hbm [shape: bf16[9,128,128], index: 4, kind: input, shape index: {}]   ;;  %s3243_s5 = inlined_call_operand.vmem [shape: f32[1,128], index: 5, kind: input, shape index: {}]   ;;  %s3244_s6 = inlined_call_operand.vmem [shape: f32[1,128], index: 6, kind: input, shape index: {}]   ;;  %s3245_s7 = inlined_call_operand.hbm [shape: bf16[128,128], index: 7, kind: input, shape index: {}]   ;;  %s3246_s8 = inlined_call_operand.vmem [shape: f32[1,128], index: 8, kind: input, shape index: {}]   ;;  %s3247_s9 = inlined_call_operand.vmem [shape: f32[1,128], index: 9, kind: input, shape index: {}]   ;;  %s3248_s10 = inlined_call_operand.hbm [shape: f32[2,64,128], index: 10, kind: output, shape index: {}]  }
   0x1   :  { %3251 = sst [smem:[#allocation17_spill]] %s3239_s1 }
   0x2   :  { %3252 = sst [smem:[#allocation18_spill]] %s3242_s4 }
   0x3   :  { %3253 = sst [smem:[#allocation19_spill]] %s3245_s7 }
   0x4   :  { %15 = vsyncpa [#allocation4], 0 }
   0x5   :  { %17 = vsyncpa [#allocation4 + $0x1], 0 }
   0x6   :  { %18 = vsyncpa [#allocation7], 0 }
   0x7   :  { %19 = vsyncpa [#allocation10], 0 }
   0x8   :  { %20 = vsyncpa [#allocation5], 0 }
   0x9   :  { %22 = vsyncpa [#allocation5 + $0x1], 0  ;;  %s2822_s13 = smov 0   ;;  %s2824_s14 = smov 0  }
   0xa   :  { %s2826_s15 = smov 0   ;;  %s2828_s16 = smov 0  }
   0xb LB: > { %s2843_s17 = sadd.s32 4294967295, %s2757_s16   ;;  %s1969_s18 = sadd.s32 4294967294, %s2757_s16   ;;  %s2757_s16 = sphi %s2828_s16, %s3271_s16   ;;  %s2753_s15 = sphi %s2826_s15, %s3270_s15   ;;  %s2749_s14 = sphi %s2824_s14, %s3269_s14   ;;  %s2745_s13 = sphi %s2822_s13, %s3268_s13  }
   0xc   : > { %p48_p0 = scmp.ne.s32.totalorder %s2749_s14, %s2745_s13  ;;  %p49_p1 = scmp.eq.s32.totalorder %s2843_s17, 0 }
   0xd   : > { %p261_p2 = scmp.eq.s32.totalorder %s2843_s17, 1  ;;  %p267_p3 = scmp.eq.s32.totalorder %s1969_s18, 1 }
   0xe   : > { %p2852_p4 = por %p49_p1, %p48_p0  ;;  %p1970_p5 = scmp.ge.s32.totalorder %s2757_s16, 1 }
   0xf   : > { %p2857_p6 = por %p267_p3, %p48_p0  ;;  %p274_p7 = scmp.lt.s32.totalorder %s2757_s16, 3 }
  0x10   : > { %s3256_s1 = sld [smem:[#allocation17_spill]]  ;;  %s2759_s25 = smov [#allocation6]  }
  0x11   : > { %p2865_p8 = pnand %p1970_p5, %p274_p7  ;;  %s287_s26 = sshll.u32 %s2759_s25, 4  ;;  %s288_s26 = int_to_ptr.vmem [resolvable:$true] %s287_s26 }
  0x12   : > { %s3259_s4 = sld [smem:[#allocation18_spill]]  ;;  %s3249_s11 = smov 64  }
  0x13   : > { %p2491_p9 = pneg %p2865_p8  ;;  %s3250_s12 = smov 4  }
  0x14   : > { %s2762_s18 = smov [#allocation8]   ;;  %s3260_s7 = sld [smem:[#allocation19_spill]] }
  0x15   : > { %p2873_p10 = pnand %p2491_p9, %p49_p1  ;;  %s307_s21 = sshll.u32 %s2762_s18, 4  ;;  %s308_s21 = int_to_ptr.vmem [resolvable:$true] %s307_s21 }
  0x16   : > { %s285_s23 = sshll.u32 %s3256_s1, 4  ;;  %s2895_s29 = sadd.s32 1, %s2757_s16   ;;  %s286_s23 = int_to_ptr.hbm [resolvable:$true] %s285_s23 }
  0x17   : > { %2494 = dma.hbm_to_vmem [thread:$0]  (!%p2873_p10), %s286_s23, 1024, %s288_s26, [#allocation7], %s3249_s11, %s3249_s11, %s3250_s12  }
  0x18   : > { %s305_s30 = sshll.u32 %s3259_s4, 4  ;;  %s2763_s23 = smov [#allocation9]   ;;  %s306_s30 = int_to_ptr.hbm [resolvable:$true] %s305_s30 }
  0x19   : > { %2497 = dma.hbm_to_vmem [thread:$0]  (!%p2873_p10), %s306_s30, 9216, %s308_s21, [#allocation7], %s3249_s11, %s3249_s11, %s3250_s12  }
  0x1a   : > { %s325_s28 = sshll.u32 %s3260_s7, 4  ;;  %s327_s26 = sshll.u32 %s2763_s23, 4  ;;  %s326_s28 = int_to_ptr.hbm [resolvable:$true] %s325_s28  ;;  %s328_s26 = int_to_ptr.vmem [resolvable:$true] %s327_s26 }
  0x1b   : > { %2500 = dma.hbm_to_vmem [thread:$0]  (!%p2873_p10), %s326_s28, 1024, %s328_s26, [#allocation10], %s3249_s11, %s3249_s11, %s3250_s12  }
  0x1c   : > { %s32_s18 = ssub.s32 %s2757_s16, %s2895_s29  ;;  %s35_s22 = sadd.s32 1, %s2753_s15 }
  0x1d   : > { %p33_p12 = scmp.eq.s32.totalorder %s32_s18, 0  ;;  %p42_p13 = scmp.ne.s32.totalorder %s2753_s15, %s2749_s14 }
  0x1e   : > { %p43_p0 = scmp.eq.s32.totalorder %s2757_s16, 0  ;;  %p2512_p5 = scmp.lt.s32.totalorder %s2757_s16, 2 }
  0x1f   : > { %s2909_s25 = scalar_select %p33_p12, %s2753_s15, %s35_s22  }
  0x20   : > { %p2913_p3 = por %p261_p2, %p42_p13  ;;  %s347_s21 = sand.u32 1, %s2753_s15  }
  0x21   : > { %3261 = sst [smem:[#allocation16_spill]] %s2909_s25  ;;  %s2357_s27 = sshll.u32 %s2757_s16, 5 }
  0x22   : > { %p44_p7 = por %p43_p0, %p42_p13  ;;  %s1975_s23 = sshll.u32 %s347_s21, 5 }
  0x23   : > { %s356_s28 = scalar_lea.hbm %s3238_s0, %s2357_s27  ;;  %s351_s18 = scalar_lea.vmem [#allocation3], %s1975_s23 }
  0x24   : > { %s357_s26 = sshll.u32 %s356_s28, 4  ;;  %s359_s11 = sshll.u32 %s351_s18, 4  ;;  %s358_s26 = int_to_ptr.hbm [resolvable:$true] %s357_s26  ;;  %s360_s11 = int_to_ptr.vmem [resolvable:$true] %s359_s11 }
  0x25   : > { %p2923_p9 = pnand %p2512_p5, %p44_p7  ;;  %s348_s12 = scalar_lea.sflag [#allocation4], %s347_s21 }
  0x26   : > { %s2653_s7 = sshra.s32 %s358_s26, 4  ;;  %s2660_s27 = scalar_lea.hbm %s3238_s0, 64  ;;  %s2654_s7 = int_to_ptr.hbm [resolvable:$true] %s2653_s7 }
  0x27   : > { %s2655_s25 = scalar_lea.hbm %s2654_s7, 32  ;;  %p2657_p10 = pneg %p2923_p9 }
  0x28   : > { %p2656_p2 = scmp.ne.s32.totalorder %s2654_s7, %s2655_s25  ;;  %p2661_p0 = scmp.lt.s32.totalorder %s2654_s7, %s3238_s0 }
  0x29   : > { %p2662_p5 = scmp.lt.s32.totalorder %s2660_s27, %s2655_s25 }
  0x2a   : > { %p2658_p12 = pnand %p2657_p10, %p2656_p2 }
  0x2b   : > { %p2663_p7 = por %p2662_p5, %p2661_p0 }
  0x2c   : > { %p2659_p13 = pneg %p2658_p12 }
  0x2e   : > { %p2664_p11 = pnand %p2663_p7, %p2659_p13 }
  0x30   : > { %2667 = shalt.err (!%p2664_p11)
}
  0x31   : > { %s3264_s21 = smov 4   ;;  %s3265_s18 = smov 64  }
  0x32   : > { %2504 = dma.hbm_to_vmem [thread:$0]  (!%p2923_p9), %s358_s26, 512, %s360_s11, %s348_s12, %s3265_s18, %s3265_s18, %s3264_s21  }
  0x33   : > { %371 = sbr.rel (%p2865_p8) target bundleno = 699 (0x2bb), region = 60  ;;  %s2943_s1 = sand.u32 (!%p2865_p8), 1, %s2749_s14  }
  0x34   : > { %s1979_s7 = sshll.u32 (!%p2865_p8), %s2943_s1, 5  ;;  %s374_s25 = scalar_lea.sflag (!%p2865_p8), [#allocation4], %s2943_s1 }
  0x35   : > { %s2947_s4 = scalar_lea.vmem (!%p2865_p8), [#allocation3], %s1979_s7 }
  0x38   : > { %2728 = dma.done.wait (%p2852_p4), %s374_s25, 512  }
  0x39   : > { %2730 = vsyncadd (%p2852_p4), %s374_s25, 4294966784 }
  0x3a   : > { %2732 = dma.done.wait (%p49_p1), [#allocation7], 10240  }
  0x3b   : > { %2734 = vsyncadd (%p49_p1), [#allocation7], 4294957056 }
  0x3c   : > { %2736 = dma.done.wait (%p49_p1), [#allocation10], 1024  }
  0x3d   : > { %2738 = vsyncadd (%p49_p1), [#allocation10], 4294966272  ;;  %v2369_v0 = vld [vmem:[#allocation6 + $0x38] sm:$0xff]  ;;  %v2368_v1 = vld [vmem:[#allocation6 + $0x30] sm:$0xff]  ;;  %v2764_v32 = vmov 0.0   ;;  %vm672_vm0 = vcmask 1046528  }
  0x3e   : > { %526 = vmatpush.bf16.msra.mxu0 %v2369_v0  ;;  %2451 = vmatpush.bf16.msra.mxu3 %v2369_v0  ;;  %v2367_v2 = vld [vmem:[#allocation6 + $0x28] sm:$0xff]  ;;  %v2366_v3 = vld [vmem:[#allocation6 + $0x20] sm:$0xff]  ;;  %v2365_v4 = vld [vmem:[#allocation6 + $0x18] sm:$0xff]  ;;  %589 = vst [vmem:[#allocation2 + $0x10] sm:$0xff] %v2764_v32  ;;  %v2999_v63 = vrot.slane %v2764_v32, 1  ;;  %vm880_vm1 = vcmask 1045504  }
  0x3f   : > { %v2377_v5 = vld [vmem:[#allocation8 + $0x38] sm:$0xff]  ;;  %v2364_v7 = vld [vmem:[#allocation6 + $0x10] sm:$0xff]  ;;  %v2363_v10 = vld [vmem:[#allocation6 + $0x8] sm:$0xff]  ;;  %590 = vst [vmem:[#allocation2 + $0x18] sm:$0x3] %v2764_v32  ;;  %s1983_s25 = sshll.u32 %s2943_s1, 6 }
  0x40   : > { %v2385_v6 = vld [vmem:[#allocation8 + $0x78] sm:$0xff]  ;;  %851 = vmatpush.bf16.msra.mxu2 %v2377_v5  ;;  %v2376_v8 = vld [vmem:[#allocation8 + $0x30] sm:$0xff]  ;;  %v2375_v11 = vld [vmem:[#allocation8 + $0x28] sm:$0xff]  ;;  %588 = vst [vmem:[#allocation2 + $0x8] sm:$0x3] %v2764_v32  ;;  %s3191_s19 = scalar_lea.vmem [#allocation11], %s1983_s25 }
  0x41   : > { %774 = vmatpush.bf16.msra.mxu1 %v2385_v6  ;;  %v2384_v9 = vld [vmem:[#allocation8 + $0x70] sm:$0xff]  ;;  %v2383_v12 = vld [vmem:[#allocation8 + $0x68] sm:$0xff]  ;;  %v2362_v13 = vld [vmem:[#allocation6] sm:$0xff]  ;;  %591 = vst [vmem:[#allocation2 + $0x20] sm:$0xff] %v2764_v32  ;;  %s2450_s24 = sshll.u32 %s2843_s17, 6  ;;  %s1864_s26 = sshll.u32 %s3191_s19, 4  ;;  %s1865_s26 = int_to_ptr.vmem [resolvable:$true] %s1864_s26 }
  0x42   : > { %527 = vmatpush.bf16.msra.mxu0 %v2368_v1  ;;  %2452 = vmatpush.bf16.msra.mxu3 %v2368_v1  ;;  %v2393_v14 = vld [vmem:[#allocation8 + $0xb8] sm:$0xff]  ;;  %v2374_v16 = vld [vmem:[#allocation8 + $0x20] sm:$0xff]  ;;  %v2360_v18 = vld [vmem:[%s2947_s4 + $0x10] sm:$0xff]  ;;  %592 = vst [vmem:[#allocation2 + $0x28] sm:$0x3] %v2764_v32  ;;  %s1863_s12 = scalar_lea.hbm %s3248_s10, %s2450_s24  ;;  %s1852_s17 = scalar_lea.sflag [#allocation5], %s2943_s1 }
  0x43   : > { %v2401_v15 = vld [vmem:[#allocation8 + $0xf8] sm:$0xff]  ;;  %v2358_v17 = vld [vmem:[%s2947_s4] sm:$0xff]  ;;  %v2392_v19 = vld [vmem:[#allocation8 + $0xb0] sm:$0xff]  ;;  %593 = vst [vmem:[#allocation2 + $0x30] sm:$0xff] %v2764_v32  ;;  %s1866_s22 = sshll.u32 %s1863_s12, 4  ;;  %s2703_s18 = scalar_lea.hbm %s3248_s10, 128  ;;  %s1867_s22 = int_to_ptr.hbm [resolvable:$true] %s1866_s22 }
  0x44   : > { %852 = vmatpush.bf16.msra.mxu2 %v2376_v8  ;;  %v2400_v20 = vld [vmem:[#allocation8 + $0xf0] sm:$0xff]  ;;  %v2391_v21 = vld [vmem:[#allocation8 + $0xa8] sm:$0xff]  ;;  %v2361_v23 = vld [vmem:[%s2947_s4 + $0x18] sm:$0xff]  ;;  %594 = vst [vmem:[#allocation2 + $0x38] sm:$0x3] %v2764_v32  ;;  %s2697_s27 = sshra.s32 %s1867_s22, 4  ;;  %s2698_s27 = int_to_ptr.hbm [resolvable:$true] %s2697_s27 }
  0x45   : > { %775 = vmatpush.bf16.msra.mxu1 %v2384_v9  ;;  %v2359_v22 = vld [vmem:[%s2947_s4 + $0x8] sm:$0xff]  ;;  %v2382_v24 = vld [vmem:[#allocation8 + $0x60] sm:$0xff]  ;;  %v2373_v27 = vld [vmem:[#allocation8 + $0x18] sm:$0xff]  ;;  %595 = vst [vmem:[#allocation2 + $0x40] sm:$0xff] %v2764_v32  ;;  %s2699_s23 = scalar_lea.hbm %s2698_s27, 64  ;;  %p2704_p11 = scmp.lt.s32.totalorder %s2698_s27, %s3248_s10 }
  0x46   : > { %528 = vmatpush.bf16.msra.mxu0 %v2367_v2  ;;  %2453 = vmatpush.bf16.msra.mxu3 %v2367_v2  ;;  %v2390_v25 = vld [vmem:[#allocation8 + $0xa0] sm:$0xff]  ;;  %v2399_v26 = vld [vmem:[#allocation8 + $0xe8] sm:$0xff]  ;;  %v2381_v28 = vld [vmem:[#allocation8 + $0x58] sm:$0xff]  ;;  %596 = vst [vmem:[#allocation2 + $0x48] sm:$0x3] %v2764_v32  ;;  %p2700_p1 = scmp.ne.s32.totalorder %s2698_s27, %s2699_s23  ;;  %p2705_p9 = scmp.lt.s32.totalorder %s2703_s18, %s2699_s23 }
  0x47   : > { %v2389_v29 = vld [vmem:[#allocation8 + $0x98] sm:$0xff]  ;;  %v2398_v30 = vld [vmem:[#allocation8 + $0xe0] sm:$0xff]  ;;  %v2372_v31 = vld [vmem:[#allocation8 + $0x10] sm:$0xff]  ;;  %597 = vst [vmem:[#allocation2 + $0x50] sm:$0xff] %v2764_v32 }
  0x48   : > { %853 = vmatpush.bf16.msra.mxu2 %v2375_v11  ;;  %v2380_v33 = vld [vmem:[#allocation8 + $0x50] sm:$0xff]  ;;  %v2397_v35 = vld [vmem:[#allocation8 + $0xd8] sm:$0xff]  ;;  %v2371_v36 = vld [vmem:[#allocation8 + $0x8] sm:$0xff]  ;;  %598 = vst [vmem:[#allocation2 + $0x58] sm:$0x3] %v2764_v32  ;;  %p2701_p4 = pnand %p2700_p1, %p2913_p3  ;;  %p2706_p2 = por %p2705_p9, %p2704_p11 }
  0x49   : > { %776 = vmatpush.bf16.msra.mxu1 %v2383_v12  ;;  %v2388_v34 = vld [vmem:[#allocation8 + $0x90] sm:$0xff]  ;;  %v2379_v37 = vld [vmem:[#allocation8 + $0x48] sm:$0xff]  ;;  %v2370_v40 = vld [vmem:[#allocation8] sm:$0xff]  ;;  %599 = vst [vmem:[#allocation2 + $0x60] sm:$0xff] %v2764_v32 }
  0x4a   : > { %529 = vmatpush.bf16.msra.mxu0 %v2366_v3  ;;  %2454 = vmatpush.bf16.msra.mxu3 %v2366_v3  ;;  %v2387_v38 = vld [vmem:[#allocation8 + $0x88] sm:$0xff]  ;;  %v2396_v39 = vld [vmem:[#allocation8 + $0xd0] sm:$0xff]  ;;  %v2378_v41 = vld [vmem:[#allocation8 + $0x40] sm:$0xff]  ;;  %600 = vst [vmem:[#allocation2 + $0x68] sm:$0x3] %v2764_v32  ;;  %v3003_v3 = vrot.slane %v2764_v32, 2  ;;  %p2702_p8 = pneg %p2701_p4 }
  0x4b   : > { %v2386_v42 = vld [vmem:[#allocation8 + $0x80] sm:$0xff]  ;;  %v2395_v43 = vld [vmem:[#allocation8 + $0xc8] sm:$0xff]  ;;  %601 = vst [vmem:[#allocation2 + $0x70] sm:$0xff] %v2764_v32  ;;  %v2409_v47 = vld [vmem:[#allocation8 + $0x138] sm:$0xff] }
  0x4c   : > { %854 = vmatpush.bf16.msra.mxu2 %v2374_v16  ;;  %602 = vst [vmem:[#allocation2 + $0x78] sm:$0x3] %v2764_v32  ;;  %v2394_v44 = vld [vmem:[#allocation8 + $0xc0] sm:$0xff]  ;;  %v2433_v48 = vld [vmem:[#allocation8 + $0x1f8] sm:$0xff]  ;;  %v2408_v51 = vld [vmem:[#allocation8 + $0x130] sm:$0xff]  ;;  %p2707_p10 = pnand %p2706_p2, %p2702_p8 }
  0x4d   : > { %777 = vmatpush.bf16.msra.mxu1 %v2382_v24  ;;  %603 = vst [vmem:[#allocation2 + $0x80] sm:$0xff] %v2764_v32  ;;  %v2986_v45 = vld [vmem:[%s3240_s2] ss:$0 sm:$0xff]  ;;  %v2432_v52 = vld [vmem:[#allocation8 + $0x1f0] sm:$0xff]  ;;  %v617_v57 = vld [vmem:[#allocation2 + $0x8] sm:$0x3] }
  0x4e   : > { %530 = vmatpush.bf16.msra.mxu0 %v2365_v4  ;;  %2455 = vmatpush.bf16.msra.mxu3 %v2365_v4  ;;  %604 = vst [vmem:[#allocation2 + $0x88] sm:$0x3] %v2764_v32  ;;  %v2991_v46 = vld [vmem:[%s3241_s3] ss:$0 sm:$0xff]  ;;  %v2407_v61 = vld [vmem:[#allocation8 + $0x128] sm:$0xff]  ;;  %v674_v0 = vrot.slane %v617_v57, 1 }
  0x4f   : > { %606 = vst [vmem:[#allocation2 + $0x98] sm:$0x3] %v2764_v32  ;;  %v2431_v62 = vld [vmem:[#allocation8 + $0x1e8] sm:$0xff]  ;;  %v882_v4 = vrot.slane %v617_v57, 2 }
  0x50   : > { %855 = vmatpush.bf16.msra.mxu2 %v2373_v27  ;;  %v675_v8 = vsel %vm672_vm0, %v2999_v63, %v674_v0 }
  0x51   : > { %778 = vmatpush.bf16.msra.mxu1 %v2381_v28 }
  0x52   : > { %531 = vmatpush.bf16.msra.mxu0 %v2364_v7  ;;  %2456 = vmatpush.bf16.msra.mxu3 %v2364_v7 }
  0x54   : > { %856 = vmatpush.bf16.msra.mxu2 %v2372_v31  ;;  %v2416_v31 = vld [vmem:[#allocation8 + $0x170] sm:$0xff] }
  0x55   : > { %779 = vmatpush.bf16.msra.mxu1 %v2380_v33 }
  0x56   : > { %532 = vmatpush.bf16.msra.mxu0 %v2363_v10  ;;  %2457 = vmatpush.bf16.msra.mxu3 %v2363_v10 }
  0x58   : > { %857 = vmatpush.bf16.msra.mxu2 %v2371_v36 }
  0x59   : > { %780 = vmatpush.bf16.msra.mxu1 %v2379_v37  ;;  %v2424_v37 = vld [vmem:[#allocation8 + $0x1b0] sm:$0xff] }
  0x5a   : > { %533 = vmatpush.bf16.msra.mxu0 %v2362_v13  ;;  %2458 = vmatpush.bf16.msra.mxu3 %v2362_v13 }
  0x5c   : > { %858 = vmatpush.bf16.msra.mxu2 %v2370_v40  ;;  %v2405_v40 = vld [vmem:[#allocation8 + $0x118] sm:$0xff] }
  0x5d   : > { %534 = vmatmul.bf16.vlgmr.msra.gmra.mxu0 %v2358_v17  ;;  %544 = vmatmul.bf16.vlgmr.msra.gmra.mxu3 %v2360_v18 }
  0x5e   : > { %982 = vmatpush.bf16.msrb.mxu3 %v2393_v14  ;;  %1088 = vmatpush.bf16.msrb.mxu0 %v2401_v15  ;;  %v883_v15 = vsel %vm880_vm1, %v3003_v3, %v882_v4 }
  0x5f   : > { %781 = vmatpush.bf16.msra.mxu1 %v2378_v41  ;;  %v2429_v41 = vld [vmem:[#allocation8 + $0x1d8] sm:$0xff] }
  0x62   : > { %983 = vmatpush.bf16.msrb.mxu3 %v2392_v19  ;;  %1089 = vmatpush.bf16.msrb.mxu0 %v2400_v20  ;;  %v2406_v20 = vld [vmem:[#allocation8 + $0x120] sm:$0xff] }
  0x63   : > { %1200 = vmatpush.bf16.msrb.mxu1 %v2409_v47 }
  0x66   : > { %984 = vmatpush.bf16.msrb.mxu3 %v2391_v21  ;;  %1090 = vmatpush.bf16.msrb.mxu0 %v2399_v26  ;;  %v2430_v21 = vld [vmem:[#allocation8 + $0x1e0] sm:$0xff] }
  0x67   : > { %1201 = vmatpush.bf16.msrb.mxu1 %v2408_v51 }
  0x6a   : > { %985 = vmatpush.bf16.msrb.mxu3 %v2390_v25  ;;  %1091 = vmatpush.bf16.msrb.mxu0 %v2398_v30 }
  0x6b   : > { %1202 = vmatpush.bf16.msrb.mxu1 %v2407_v61 }
  0x6d   : > { %539 = vmatmul.bf16.gmra.mxu0 %v2359_v22  ;;  %549 = vmatmul.bf16.gmra.mxu3 %v2361_v23  ;;  %v2417_v22 = vld [vmem:[#allocation8 + $0x178] sm:$0xff] }
  0x6e   : > { %986 = vmatpush.bf16.msrb.mxu3 %v2389_v29  ;;  %1092 = vmatpush.bf16.msrb.mxu0 %v2397_v35  ;;  %v2425_v29 = vld [vmem:[#allocation8 + $0x1b8] sm:$0xff] }
  0x6f   : > { %1203 = vmatpush.bf16.msrb.mxu1 %v2406_v20  ;;  %1310 = vmatpush.bf16.msrb.mxu2 %v2417_v22 }
  0x72   : > { %987 = vmatpush.bf16.msrb.mxu3 %v2388_v34  ;;  %1093 = vmatpush.bf16.msrb.mxu0 %v2396_v39 }
  0x73   : > { %1311 = vmatpush.bf16.msrb.mxu2 %v2416_v31  ;;  %1204 = vmatpush.bf16.msrb.mxu1 %v2405_v40  ;;  %v2410_v40 = vld [vmem:[#allocation8 + $0x140] sm:$0xff] }
  0x76   : > { %988 = vmatpush.bf16.msrb.mxu3 %v2387_v38  ;;  %1094 = vmatpush.bf16.msrb.mxu0 %v2395_v43 }
  0x7a   : > { %989 = vmatpush.bf16.msrb.mxu3 %v2386_v42  ;;  %1095 = vmatpush.bf16.msrb.mxu0 %v2394_v44  ;;  %v2415_v42 = vld [vmem:[#allocation8 + $0x168] sm:$0xff] }
  0x7b   : > { %v2423_v44 = vld [vmem:[#allocation8 + $0x1a8] sm:$0xff]  ;;  %1312 = vmatpush.bf16.msrb.mxu2 %v2415_v42 }
  0x7e   : > { %1522 = vmatpush.bf16.msra.mxu0 %v2433_v48  ;;  %1413 = vmatpush.bf16.msra.mxu3 %v2425_v29 }
  0x82   : > { %1523 = vmatpush.bf16.msra.mxu0 %v2432_v52  ;;  %1414 = vmatpush.bf16.msra.mxu3 %v2424_v37 }
  0x86   : > { %1524 = vmatpush.bf16.msra.mxu0 %v2431_v62  ;;  %1415 = vmatpush.bf16.msra.mxu3 %v2423_v44  ;;  %v635_v62 = vld [vmem:[#allocation2 + $0x98] sm:$0x3] }
  0x8a   : > { %1525 = vmatpush.bf16.msra.mxu0 %v2430_v21 }
  0x8e   : > { %1526 = vmatpush.bf16.msra.mxu0 %v2429_v41 }
  0xda   : > { %v535_v49 = vpop.f32.mrf.mxu0 }
  0xdb   : > { %v559_v50 = vmul.f32 %v2986_v45, %v535_v49  ;;  %v2414_v49 = vld [vmem:[#allocation8 + $0x160] sm:$0xff] }
  0xdc   : > { %1313 = vmatpush.bf16.msrb.mxu2 %v2414_v49 }
  0xdd   : > { %v571_v53 = vadd.f32 %v2991_v46, %v559_v50 }
  0xdf   : > { %v579_v54 = vmax.f32 %v571_v53, 0.0 }
  0xe0   : > { %v545_v55 = vpop.f32.mrf.mxu3 }
  0xe1   : > { %608 = vst [vmem:[#allocation2 + $0x11] sm:$0xff] %v579_v54  ;;  %v563_v56 = vmul.f32 %v2986_v45, %v545_v55 }
  0xe2   : > { %v537_v58 = vpop.f32.mrf.mxu0 }
  0xe3   : > { %v560_v59 = vmul.f32 %v2986_v45, %v537_v58  ;;  %v575_v60 = vadd.f32 %v2991_v46, %v563_v56 }
  0xe5   : > { %v572_v1 = vadd.f32 %v2991_v46, %v560_v59  ;;  %v583_v2 = vmax.f32 %v575_v60, 0.0 }
  0xe7   : > { %v580_v5 = vmax.f32 %v572_v1, 0.0  ;;  %612 = vst [vmem:[#allocation2 + $0x51] sm:$0xff] %v583_v2  ;;  %v2422_v2 = vld [vmem:[#allocation8 + $0x1a0] sm:$0xff] }
  0xe8   : > { %v618_v6 = vld [vmem:[#allocation2 + $0x10] sm:$0xff]  ;;  %v619_v7 = vld [vmem:[#allocation2 + $0x18] sm:$0x3]  ;;  %v547_v9 = vpop.f32.mrf.mxu3  ;;  %1416 = vmatpush.bf16.msra.mxu3 %v2422_v2 }
  0xe9   : > { %609 = vst [vmem:[#allocation2 + $0x21] sm:$0xff] %v580_v5  ;;  %v636_v10 = vpack.c.bf16 %v618_v6, %v2764_v32  ;;  %v676_v11 = vrot.slane %v618_v6, 1  ;;  %v677_v12 = vrot.slane %v619_v7, 1  ;;  %v885_v13 = vrot.slane %v619_v7, 2  ;;  %v2428_v7 = vld [vmem:[#allocation8 + $0x1d0] sm:$0xff] }
  0xea   : > { %v540_v14 = vpop.f32.mrf.mxu0  ;;  %v884_v16 = vrot.slane %v618_v6, 2  ;;  %v564_v17 = vmul.f32 %v2986_v45, %v547_v9  ;;  %v1453_v9 = vrot.slane %v635_v62, 1  ;;  %1527 = vmatpush.bf16.msra.mxu0 %v2428_v7 }
  0xeb   : > { %v561_v18 = vmul.f32 %v2986_v45, %v540_v14  ;;  %859 = vmatmul.bf16.vlgmr.msra.gmra.mxu2 %v636_v10  ;;  %v3013_v19 = vsel %vm672_vm0, %v676_v11, %v677_v12  ;;  %v1560_v10 = vrot.slane %v635_v62, 2 }
  0xec   : > { %v705_v23 = vpack.c.bf16 %v3013_v19, %v675_v8  ;;  %v3017_v24 = vsel %vm880_vm1, %v884_v16, %v885_v13  ;;  %v576_v25 = vadd.f32 %v2991_v46, %v564_v17  ;;  %v2413_v8 = vld [vmem:[#allocation8 + $0x158] sm:$0xff] }
  0xed   : > { %v573_v26 = vadd.f32 %v2991_v46, %v561_v18  ;;  %v913_v27 = vpack.c.bf16 %v3017_v24, %v883_v15  ;;  %v3053_v15 = vsel %vm672_vm0, %v2999_v63, %v1453_v9  ;;  %1314 = vmatpush.bf16.msrb.mxu2 %v2413_v8  ;;  %v2421_v17 = vld [vmem:[#allocation8 + $0x198] sm:$0xff]  ;;  %v3058_v18 = vsel %vm880_vm1, %v3003_v3, %v1560_v10 }
  0xee   : > { %782 = vmatmul.bf16.vlgmr.msra.gmra.mxu1 %v705_v23  ;;  %v584_v28 = vmax.f32 %v576_v25, 0.0  ;;  %1417 = vmatpush.bf16.msra.mxu3 %v2421_v17  ;;  %v626_v22 = vld [vmem:[#allocation2 + $0x50] sm:$0xff]  ;;  %v627_v63 = vld [vmem:[#allocation2 + $0x58] sm:$0x3] }
  0xef   : > { %v581_v30 = vmax.f32 %v573_v26, 0.0  ;;  %990 = vmatmul.bf16.vlgmr.msrb.gmra.mxu3 %v913_v27  ;;  %v2420_v25 = vld [vmem:[#allocation8 + $0x190] sm:$0xff]  ;;  %v2403_v26 = vld [vmem:[#allocation8 + $0x108] sm:$0xff]  ;;  %v2441_v10 = vld [vmem:[#allocation8 + $0x238] sm:$0xff] }
  0xf0   : > { %613 = vst [vmem:[#allocation2 + $0x61] sm:$0xff] %v584_v28  ;;  %v620_v32 = vld [vmem:[#allocation2 + $0x20] sm:$0xff]  ;;  %v550_v33 = vpop.f32.mrf.mxu3  ;;  %v621_v43 = vld [vmem:[#allocation2 + $0x28] sm:$0x3] }
  0xf1   : > { %610 = vst [vmem:[#allocation2 + $0x31] sm:$0xff] %v581_v30  ;;  %v1019_v34 = vpack.c.bf16 %v620_v32, %v618_v6  ;;  %v565_v35 = vmul.f32 %v2986_v45, %v550_v33  ;;  %v679_v51 = vrot.slane %v620_v32, 1  ;;  %v680_v52 = vrot.slane %v621_v43, 1  ;;  %v2404_v6 = vld [vmem:[#allocation8 + $0x110] sm:$0xff]  ;;  %v2427_v27 = vld [vmem:[#allocation8 + $0x1c8] sm:$0xff] }
  0xf2   : > { %v542_v36 = vpop.f32.mrf.mxu0  ;;  %v887_v55 = vrot.slane %v620_v32, 2  ;;  %v888_v56 = vrot.slane %v621_v43, 2  ;;  %1205 = vmatpush.bf16.msrb.mxu1 %v2404_v6  ;;  %v2411_v28 = vld [vmem:[#allocation8 + $0x148] sm:$0xff]  ;;  %1418 = vmatpush.bf16.msra.mxu3 %v2420_v25  ;;  %v688_v33 = vrot.slane %v626_v22, 1 }
  0xf3   : > { %v562_v38 = vmul.f32 %v2986_v45, %v542_v36  ;;  %1096 = vmatmul.bf16.vlgmr.msrb.gmra.mxu0 %v1019_v34  ;;  %v577_v39 = vadd.f32 %v2991_v46, %v565_v35  ;;  %v3031_v4 = vsel %vm672_vm0, %v679_v51, %v680_v52  ;;  %v2419_v30 = vld [vmem:[#allocation8 + $0x188] sm:$0xff]  ;;  %v689_v34 = vrot.slane %v627_v63, 1  ;;  %v2402_v35 = vld [vmem:[#allocation8 + $0x100] sm:$0xff] }
  0xf4   : > { %1528 = vmatpush.bf16.msra.mxu0 %v2427_v27 }
  0xf5   : > { %v574_v47 = vadd.f32 %v2991_v46, %v562_v38  ;;  %v585_v48 = vmax.f32 %v577_v39, 0.0  ;;  %v896_v38 = vrot.slane %v626_v22, 2  ;;  %v897_v39 = vrot.slane %v627_v63, 2 }
  0xf6   : > { %1206 = vmatpush.bf16.msrb.mxu1 %v2403_v26  ;;  %1419 = vmatpush.bf16.msra.mxu3 %v2419_v30  ;;  %v3077_v52 = vsel %vm672_vm0, %v688_v33, %v689_v34  ;;  %v2440_v26 = vld [vmem:[#allocation8 + $0x230] sm:$0xff]  ;;  %v2439_v30 = vld [vmem:[#allocation8 + $0x228] sm:$0xff]  ;;  %v1131_v33 = vpack.c.bf16 %v3031_v4, %v3013_v19 }
  0xf7   : > { %v582_v50 = vmax.f32 %v574_v47, 0.0  ;;  %614 = vst [vmem:[#allocation2 + $0x71] sm:$0xff] %v585_v48  ;;  %v628_v7 = vld [vmem:[#allocation2 + $0x60] sm:$0xff]  ;;  %v629_v9 = vld [vmem:[#allocation2 + $0x68] sm:$0x3] }
  0xf8   : > { %v622_v53 = vld [vmem:[#allocation2 + $0x30] sm:$0xff]  ;;  %v623_v54 = vld [vmem:[#allocation2 + $0x38] sm:$0x3]  ;;  %v552_v57 = vpop.f32.mrf.mxu3  ;;  %v1021_v8 = vpack.c.bf16 %v628_v7, %v626_v22  ;;  %v899_v17 = vrot.slane %v628_v7, 2  ;;  %v2435_v19 = vld [vmem:[#allocation8 + $0x208] sm:$0xff] }
  0xf9   : > { %611 = vst [vmem:[#allocation2 + $0x41] sm:$0xff] %v582_v50  ;;  %v3026_v58 = vpack.c.bf16 %v622_v53, %v620_v32  ;;  %v682_v59 = vrot.slane %v622_v53, 1  ;;  %v683_v60 = vrot.slane %v623_v54, 1  ;;  %v890_v61 = vrot.slane %v622_v53, 2 }
  0xfa   : > { %v891_v0 = vrot.slane %v623_v54, 2  ;;  %v566_v1 = vmul.f32 %v2986_v45, %v552_v57  ;;  %v3041_v45 = vsel %vm880_vm1, %v887_v55, %v888_v56  ;;  %1207 = vmatpush.bf16.msrb.mxu1 %v2402_v35  ;;  %v3081_v55 = vsel %vm880_vm1, %v896_v38, %v897_v39  ;;  %v2418_v56 = vld [vmem:[#allocation8 + $0x180] sm:$0xff]  ;;  %v2436_v35 = vld [vmem:[#allocation8 + $0x210] sm:$0xff] }
  0xfb   : > { %864 = vmatmul.bf16.gmra.mxu2 %v3026_v58  ;;  %v3034_v5 = vsel %vm672_vm0, %v682_v59, %v683_v60  ;;  %v2426_v60 = vld [vmem:[#allocation8 + $0x1c0] sm:$0xff]  ;;  %1420 = vmatpush.bf16.msra.mxu3 %v2418_v56 }
  0xfc   : > { %v3038_v11 = vpack.c.bf16 %v3034_v5, %v3031_v4  ;;  %v3044_v12 = vsel %vm880_vm1, %v890_v61, %v891_v0  ;;  %v578_v13 = vadd.f32 %v2991_v46, %v566_v1  ;;  %v2412_v46 = vld [vmem:[#allocation8 + $0x150] sm:$0xff]  ;;  %1529 = vmatpush.bf16.msra.mxu0 %v2426_v60  ;;  %v2434_v4 = vld [vmem:[#allocation8 + $0x200] sm:$0xff] }
  0xfd   : > { %v3049_v14 = vpack.c.bf16 %v3044_v12, %v3041_v45  ;;  %1315 = vmatpush.bf16.msrb.mxu2 %v2412_v46  ;;  %v900_v46 = vrot.slane %v629_v9, 2 }
  0xfe   : > { %787 = vmatmul.bf16.gmra.mxu1 %v3038_v11  ;;  %v586_v16 = vmax.f32 %v578_v13, 0.0  ;;  %v3061_v29 = vld [vmem:[#allocation2 + $0x70] sm:$0xff]  ;;  %v3063_v3 = vld [vmem:[#allocation2 + $0x78] sm:$0x3]  ;;  %v691_v13 = vrot.slane %v628_v7, 1 }
  0xff   : > { %995 = vmatmul.bf16.gmra.mxu3 %v3049_v14  ;;  %v694_v41 = vrot.slane %v3061_v29, 1  ;;  %v695_v42 = vrot.slane %v3063_v3, 1  ;;  %2459 = vmatpush.bf16.msra.mxu1 %v2441_v10  ;;  %v901_v25 = vsel %vm880_vm1, %v899_v17, %v900_v46 }
 0x100   : > { %v624_v20 = vld [vmem:[#allocation2 + $0x40] sm:$0xff]  ;;  %615 = vst [vmem:[#allocation2 + $0x81] sm:$0xff] %v586_v16  ;;  %v625_v23 = vld [vmem:[#allocation2 + $0x48] sm:$0x3]  ;;  %v692_v16 = vrot.slane %v629_v9, 1  ;;  %1629 = vmatpush.bf16.msrb.mxu0 %v2441_v10 }
 0x101   : > { %v1020_v21 = vpack.c.bf16 %v624_v20, %v622_v53  ;;  %v685_v31 = vrot.slane %v624_v20, 1  ;;  %v686_v32 = vrot.slane %v625_v23, 1  ;;  %v893_v36 = vrot.slane %v624_v20, 2  ;;  %1316 = vmatpush.bf16.msrb.mxu2 %v2411_v28 }
 0x102   : > { %v894_v37 = vrot.slane %v625_v23, 2  ;;  %v3071_v50 = vpack.c.bf16 %v626_v22, %v624_v20  ;;  %v3088_v59 = vsel %vm672_vm0, %v694_v41, %v695_v42  ;;  %v902_v20 = vrot.slane %v3061_v29, 2 }
 0x103   : > { %1101 = vmatmul.bf16.gmra.mxu0 %v1020_v21  ;;  %v3074_v51 = vsel %vm672_vm0, %v685_v31, %v686_v32  ;;  %v903_v21 = vrot.slane %v3063_v3, 2  ;;  %v639_v23 = vpack.c.bf16 %v3061_v29, %v628_v7  ;;  %v693_v63 = vsel %vm672_vm0, %v691_v13, %v692_v16  ;;  %2460 = vmatpush.bf16.msra.mxu1 %v2440_v26  ;;  %v2438_v32 = vld [vmem:[#allocation8 + $0x220] sm:$0xff] }
 0x104   : > { %v895_v54 = vsel %vm880_vm1, %v893_v36, %v894_v37  ;;  %v707_v0 = vpack.c.bf16 %v3077_v52, %v3074_v51  ;;  %v708_v27 = vpack.c.bf16 %v3088_v59, %v693_v63  ;;  %1630 = vmatpush.bf16.msrb.mxu0 %v2440_v26  ;;  %v1241_v31 = vpack.c.bf16 %v3041_v45, %v3017_v24 }
 0x105   : > { %1317 = vmatpush.bf16.msrb.mxu2 %v2410_v40  ;;  %v3102_v6 = vpack.c.bf16 %v3081_v55, %v895_v54  ;;  %v904_v22 = vsel %vm880_vm1, %v902_v20, %v903_v21  ;;  %v1242_v34 = vpack.c.bf16 %v895_v54, %v3044_v12  ;;  %v1132_v24 = vpack.c.bf16 %v3074_v51, %v3034_v5 }
 0x106   : > { %v3112_v28 = vpack.c.bf16 %v904_v22, %v901_v25 }
 0x107   : > { %v3067_v43 = vld [vmem:[#allocation2 + $0x80] sm:$0xff]  ;;  %v633_v44 = vld [vmem:[#allocation2 + $0x88] sm:$0x3]  ;;  %2461 = vmatpush.bf16.msra.mxu1 %v2439_v30 }
 0x108   : > { %v1237_v47 = vrot.slane %v3067_v43, 2  ;;  %v1238_v48 = vrot.slane %v633_v44, 2  ;;  %v1127_v49 = vrot.slane %v3067_v43, 1  ;;  %v1128_v53 = vrot.slane %v633_v44, 1  ;;  %1631 = vmatpush.bf16.msrb.mxu0 %v2439_v30 }
 0x109   : > { %v1022_v3 = vpack.c.bf16 %v3067_v43, %v3061_v29  ;;  %v2437_v29 = vld [vmem:[#allocation8 + $0x218] sm:$0xff]  ;;  %v1347_v45 = vpack.c.bf16 0.0, %v3067_v43 }
 0x10a   : > { %v3084_v57 = vsel %vm880_vm1, %v1237_v47, %v1238_v48  ;;  %v3091_v61 = vsel %vm672_vm0, %v1127_v49, %v1128_v53 }
 0x10b   : > { %869 = vmatmul.bf16.gmra.mxu2 %v3071_v50  ;;  %v1563_v62 = vpack.c.bf16 %v3058_v18, %v3084_v57  ;;  %v1134_v1 = vpack.c.bf16 %v3091_v61, %v3088_v59  ;;  %v1456_v2 = vpack.c.bf16 %v3053_v15, %v3091_v61  ;;  %2462 = vmatpush.bf16.msra.mxu1 %v2438_v32 }
 0x10c   : > { %1632 = vmatpush.bf16.msrb.mxu0 %v2438_v32  ;;  %v1244_v5 = vpack.c.bf16 %v3084_v57, %v904_v22 }
 0x10e   : > { %792 = vmatmul.bf16.gmra.mxu1 %v707_v0 }
 0x10f   : > { %1000 = vmatmul.bf16.gmra.mxu3 %v3102_v6  ;;  %2463 = vmatpush.bf16.msra.mxu1 %v2437_v29 }
 0x110   : > { %1633 = vmatpush.bf16.msrb.mxu0 %v2437_v29 }
 0x113   : > { %1106 = vmatmul.bf16.gmra.mxu0 %v1021_v8  ;;  %2464 = vmatpush.bf16.msra.mxu1 %v2436_v35 }
 0x114   : > { %1634 = vmatpush.bf16.msrb.mxu0 %v2436_v35 }
 0x117   : > { %2465 = vmatpush.bf16.msra.mxu1 %v2435_v19 }
 0x118   : > { %1635 = vmatpush.bf16.msrb.mxu0 %v2435_v19  ;;  %v2448_v19 = vld [vmem:[#allocation9 + $0x30] sm:$0xff] }
 0x11b   : > { %874 = vmatmul.bf16.gmra.mxu2 %v639_v23  ;;  %2466 = vmatpush.bf16.msra.mxu1 %v2434_v4 }
 0x11c   : > { %1636 = vmatpush.bf16.msrb.mxu0 %v2434_v4 }
 0x11e   : > { %797 = vmatmul.bf16.gmra.mxu1 %v708_v27 }
 0x11f   : > { %1005 = vmatmul.bf16.gmra.mxu3 %v3112_v28 }
 0x123   : > { %1111 = vmatmul.bf16.gmra.mxu0 %v1022_v3 }
 0x12b   : > { %1318 = vmatmul.bf16.vlgmr.msrb.gmra.mxu2 %v1241_v31 }
 0x12e   : > { %1208 = vmatmul.bf16.vlgmr.msrb.gmra.mxu1 %v1131_v33 }
 0x12f   : > { %1421 = vmatmul.bf16.vlgmr.msra.gmra.mxu3 %v3026_v58  ;;  %v1243_v58 = vpack.c.bf16 %v901_v25, %v3081_v55 }
 0x133   : > { %1530 = vmatmul.bf16.vlgmr.msra.gmra.mxu0 %v3038_v11  ;;  %v1133_v11 = vpack.c.bf16 %v693_v63, %v3077_v52 }
 0x13b   : > { %1323 = vmatmul.bf16.gmra.mxu2 %v1242_v34 }
 0x13e   : > { %1213 = vmatmul.bf16.gmra.mxu1 %v1132_v24 }
 0x13f   : > { %1426 = vmatmul.bf16.gmra.mxu3 %v3071_v50 }
 0x143   : > { %1535 = vmatmul.bf16.gmra.mxu0 %v707_v0 }
 0x14b   : > { %1328 = vmatmul.bf16.gmra.mxu2 %v1243_v58 }
 0x14e   : > { %1218 = vmatmul.bf16.gmra.mxu1 %v1133_v11 }
 0x14f   : > { %1431 = vmatmul.bf16.gmra.mxu3 %v639_v23 }
 0x153   : > { %1540 = vmatmul.bf16.gmra.mxu0 %v708_v27 }
 0x15b   : > { %1333 = vmatmul.bf16.gmra.mxu2 %v1244_v5 }
 0x15e   : > { %1223 = vmatmul.bf16.gmra.mxu1 %v1134_v1 }
 0x15f   : > { %1436 = vmatmul.bf16.gmra.mxu3 %v1347_v45 }
 0x163   : > { %1545 = vmatmul.bf16.gmra.mxu0 %v1456_v2 }
 0x16b   : > { %v783_v12 = vpop.f32.mrf.mxu1 }
 0x16e   : > { %v860_v36 = vpop.f32.mrf.mxu2  ;;  %1642 = vmatmul.bf16.vlgmr.msra.gmra.mxu1 %v3102_v6 }
 0x16f   : > { %v861_v37 = vadd.f32 %v860_v36, %v783_v12 }
 0x170   : > { %v1097_v38 = vpop.f32.mrf.mxu0 }
 0x172   : > { %v991_v39 = vpop.f32.mrf.mxu3 }
 0x173   : > { %v1011_v40 = vadd.f32 %v991_v39, %v861_v37  ;;  %v785_v41 = vpop.f32.mrf.mxu1  ;;  %1637 = vmatmul.bf16.vlgmr.msrb.gmra.mxu0 %v3049_v14  ;;  %v2447_v37 = vld [vmem:[#allocation9 + $0x28] sm:$0xff] }
 0x175   : > { %v1117_v42 = vadd.f32 %v1097_v38, %v1011_v40 }
 0x176   : > { %v862_v43 = vpop.f32.mrf.mxu2 }
 0x177   : > { %v863_v44 = vadd.f32 %v862_v43, %v785_v41 }
 0x178   : > { %v1099_v47 = vpop.f32.mrf.mxu0 }
 0x17a   : > { %v993_v48 = vpop.f32.mrf.mxu3 }
 0x17b   : > { %v1012_v49 = vadd.f32 %v993_v48, %v863_v44  ;;  %v788_v50 = vpop.f32.mrf.mxu1  ;;  %v2446_v44 = vld [vmem:[#allocation9 + $0x20] sm:$0xff] }
 0x17d   : > { %v3139_v15 = vadd.f32 %v1099_v47, %v1012_v49 }
 0x17e   : > { %v865_v51 = vpop.f32.mrf.mxu2  ;;  %1647 = vmatmul.bf16.gmra.mxu1 %v3112_v28 }
 0x17f   : > { %v866_v52 = vadd.f32 %v865_v51, %v788_v50 }
 0x180   : > { %v1102_v53 = vpop.f32.mrf.mxu0 }
 0x182   : > { %v996_v54 = vpop.f32.mrf.mxu3 }
 0x183   : > { %v1013_v55 = vadd.f32 %v996_v54, %v866_v52  ;;  %v790_v56 = vpop.f32.mrf.mxu1 }
 0x185   : > { %v1119_v59 = vadd.f32 %v1102_v53, %v1013_v55  ;;  %v2445_v53 = vld [vmem:[#allocation9 + $0x18] sm:$0xff] }
 0x186   : > { %v867_v60 = vpop.f32.mrf.mxu2 }
 0x187   : > { %v868_v14 = vadd.f32 %v867_v60, %v790_v56 }
 0x188   : > { %v1104_v61 = vpop.f32.mrf.mxu0 }
 0x18a   : > { %v998_v0 = vpop.f32.mrf.mxu3 }
 0x18b   : > { %v1014_v1 = vadd.f32 %v998_v0, %v868_v14  ;;  %v793_v2 = vpop.f32.mrf.mxu1 }
 0x18d   : > { %v3142_v6 = vadd.f32 %v1104_v61, %v1014_v1 }
 0x18e   : > { %v870_v7 = vpop.f32.mrf.mxu2  ;;  %1652 = vmatmul.bf16.gmra.mxu1 %v1563_v62  ;;  %v2449_v62 = vld [vmem:[#allocation9 + $0x38] sm:$0xff] }
 0x18f   : > { %v871_v8 = vadd.f32 %v870_v7, %v793_v2  ;;  %1766 = vmatpush.bf16.msra.mxu2 %v2449_v62  ;;  %2467 = vmatpush.bf16.msrb.mxu3 %v2449_v62 }
 0x190   : > { %v1107_v9 = vpop.f32.mrf.mxu0 }
 0x192   : > { %v1001_v10 = vpop.f32.mrf.mxu3 }
 0x193   : > { %v1015_v13 = vadd.f32 %v1001_v10, %v871_v8  ;;  %v795_v16 = vpop.f32.mrf.mxu1  ;;  %1767 = vmatpush.bf16.msra.mxu2 %v2448_v19  ;;  %2468 = vmatpush.bf16.msrb.mxu3 %v2448_v19 }
 0x195   : > { %v1121_v17 = vadd.f32 %v1107_v9, %v1015_v13  ;;  %v2443_v13 = vld [vmem:[#allocation9 + $0x8] sm:$0xff] }
 0x196   : > { %v872_v46 = vpop.f32.mrf.mxu2 }
 0x197   : > { %v873_v20 = vadd.f32 %v872_v46, %v795_v16  ;;  %1768 = vmatpush.bf16.msra.mxu2 %v2447_v37  ;;  %2469 = vmatpush.bf16.msrb.mxu3 %v2447_v37 }
 0x198   : > { %v1109_v21 = vpop.f32.mrf.mxu0 }
 0x19a   : > { %v1003_v23 = vpop.f32.mrf.mxu3 }
 0x19b   : > { %v1016_v63 = vadd.f32 %v1003_v23, %v873_v20  ;;  %v798_v25 = vpop.f32.mrf.mxu1  ;;  %1769 = vmatpush.bf16.msra.mxu2 %v2446_v44  ;;  %2470 = vmatpush.bf16.msrb.mxu3 %v2446_v44  ;;  %v2442_v20 = vld [vmem:[#allocation9] sm:$0xff] }
 0x19d   : > { %v3147_v22 = vadd.f32 %v1109_v21, %v1016_v63 }
 0x19e   : > { %v875_v26 = vpop.f32.mrf.mxu2 }
 0x19f   : > { %v876_v27 = vadd.f32 %v875_v26, %v798_v25  ;;  %1770 = vmatpush.bf16.msra.mxu2 %v2445_v53  ;;  %2471 = vmatpush.bf16.msrb.mxu3 %v2445_v53 }
 0x1a0   : > { %v1112_v28 = vpop.f32.mrf.mxu0 }
 0x1a2   : > { %v1006_v3 = vpop.f32.mrf.mxu3 }
 0x1a3   : > { %v1017_v18 = vadd.f32 %v1006_v3, %v876_v27  ;;  %v800_v57 = vpop.f32.mrf.mxu1 }
 0x1a5   : > { %v3149_v30 = vadd.f32 %v1112_v28, %v1017_v18  ;;  %v3164_v18 = vld [vmem:[%s3243_s5] ss:$0 sm:$0xff] }
 0x1a6   : > { %v877_v31 = vpop.f32.mrf.mxu2 }
 0x1a7   : > { %v878_v32 = vadd.f32 %v877_v31, %v800_v57 }
 0x1a8   : > { %v1114_v33 = vpop.f32.mrf.mxu0 }
 0x1aa   : > { %v1008_v29 = vpop.f32.mrf.mxu3 }
 0x1ab   : > { %v1018_v34 = vadd.f32 %v1008_v29, %v878_v32  ;;  %v1209_v35 = vpop.f32.mrf.mxu1 }
 0x1ac   : > { %v1229_v24 = vadd.f32 %v1209_v35, %v1117_v42 }
 0x1ad   : > { %v3151_v58 = vadd.f32 %v1114_v33, %v1018_v34 }
 0x1ae   : > { %v1319_v4 = vpop.f32.mrf.mxu2 }
 0x1af   : > { %v1339_v11 = vadd.f32 %v1319_v4, %v1229_v24 }
 0x1b0   : > { %v1531_v5 = vpop.f32.mrf.mxu0 }
 0x1b2   : > { %v1422_v45 = vpop.f32.mrf.mxu3 }
 0x1b3   : > { %v1442_v12 = vadd.f32 %v1422_v45, %v1339_v11  ;;  %v1211_v36 = vpop.f32.mrf.mxu1 }
 0x1b4   : > { %v1230_v26 = vadd.f32 %v1211_v36, %v3139_v15 }
 0x1b5   : > { %v1551_v38 = vadd.f32 %v1531_v5, %v1442_v12 }
 0x1b6   : > { %v1321_v39 = vpop.f32.mrf.mxu2 }
 0x1b7   : > { %v1340_v57 = vadd.f32 %v1321_v39, %v1230_v26 }
 0x1b8   : > { %v3153_v40 = vpop.f32.mrf.mxu0 }
 0x1ba   : > { %v1424_v41 = vpop.f32.mrf.mxu3 }
 0x1bb   : > { %v1214_v42 = vpop.f32.mrf.mxu1  ;;  %v1443_v33 = vadd.f32 %v1424_v41, %v1340_v57 }
 0x1bc   : > { %v1231_v43 = vadd.f32 %v1214_v42, %v1119_v59  ;;  %v2444_v59 = vld [vmem:[#allocation9 + $0x10] sm:$0xff] }
 0x1bd   : > { %1771 = vmatpush.bf16.msra.mxu2 %v2444_v59  ;;  %2472 = vmatpush.bf16.msrb.mxu3 %v2444_v59  ;;  %v1552_v45 = vadd.f32 %v3153_v40, %v1443_v33  ;;  %v430_v33 = vld [vmem:[%s2947_s4] sm:$0xff]  }
 0x1be   : > { %v1324_v47 = vpop.f32.mrf.mxu2 }
 0x1bf   : > { %v1341_v48 = vadd.f32 %v1324_v47, %v1231_v43 }
 0x1c0   : > { %v1536_v49 = vpop.f32.mrf.mxu0 }
 0x1c1   : > { %1772 = vmatpush.bf16.msra.mxu2 %v2443_v13  ;;  %2473 = vmatpush.bf16.msrb.mxu3 %v2443_v13 }
 0x1c2   : > { %v1427_v50 = vpop.f32.mrf.mxu3 }
 0x1c3   : > { %v1444_v51 = vadd.f32 %v1427_v50, %v1341_v48  ;;  %v1216_v52 = vpop.f32.mrf.mxu1 }
 0x1c4   : > { %v1232_v23 = vadd.f32 %v1216_v52, %v3142_v6  ;;  %v2560_v6 = vld [vmem:[%s3244_s6] ss:$0 sm:$0xff] }
 0x1c5   : > { %v1553_v54 = vadd.f32 %v1536_v49, %v1444_v51  ;;  %1773 = vmatpush.bf16.msra.mxu2 %v2442_v20  ;;  %2474 = vmatpush.bf16.msrb.mxu3 %v2442_v20 }
 0x1c6   : > { %v1326_v55 = vpop.f32.mrf.mxu2 }
 0x1c7   : > { %v1342_v25 = vadd.f32 %v1326_v55, %v1232_v23 }
 0x1c8   : > { %v1538_v56 = vpop.f32.mrf.mxu0 }
 0x1ca   : > { %v1429_v60 = vpop.f32.mrf.mxu3 }
 0x1cb   : > { %v1219_v14 = vpop.f32.mrf.mxu1  ;;  %v1445_v28 = vadd.f32 %v1429_v60, %v1342_v25 }
 0x1cc   : > { %v1233_v61 = vadd.f32 %v1219_v14, %v1121_v17 }
 0x1cd   : > { %v1554_v32 = vadd.f32 %v1538_v56, %v1445_v28 }
 0x1ce   : > { %v1329_v0 = vpop.f32.mrf.mxu2 }
 0x1cf   : > { %v1343_v1 = vadd.f32 %v1329_v0, %v1233_v61 }
 0x1d0   : > { %v1541_v2 = vpop.f32.mrf.mxu0 }
 0x1d2   : > { %v1432_v7 = vpop.f32.mrf.mxu3 }
 0x1d3   : > { %v1446_v8 = vadd.f32 %v1432_v7, %v1343_v1  ;;  %v1221_v9 = vpop.f32.mrf.mxu1 }
 0x1d4   : > { %v1234_v24 = vadd.f32 %v1221_v9, %v3147_v22 }
 0x1d5   : > { %v1555_v10 = vadd.f32 %v1541_v2, %v1446_v8 }
 0x1d6   : > { %v1331_v29 = vpop.f32.mrf.mxu2 }
 0x1d7   : > { %v1344_v39 = vadd.f32 %v1331_v29, %v1234_v24 }
 0x1d8   : > { %v1543_v16 = vpop.f32.mrf.mxu0 }
 0x1da   : > { %v1434_v11 = vpop.f32.mrf.mxu3 }
 0x1db   : > { %v1224_v46 = vpop.f32.mrf.mxu1  ;;  %v1447_v49 = vadd.f32 %v1434_v11, %v1344_v39 }
 0x1dc   : > { %v1235_v53 = vadd.f32 %v1224_v46, %v3149_v30 }
 0x1dd   : > { %v1556_v56 = vadd.f32 %v1543_v16, %v1447_v49 }
 0x1de   : > { %v1334_v22 = vpop.f32.mrf.mxu2 }
 0x1df   : > { %v1345_v14 = vadd.f32 %v1334_v22, %v1235_v53  ;;  %v436_v22 = vld [vmem:[%s2947_s4 + $0x18] sm:$0xff]  }
 0x1e0   : > { %v3155_v21 = vpop.f32.mrf.mxu0 }
 0x1e2   : > { %v1437_v40 = vpop.f32.mrf.mxu3 }
 0x1e3   : > { %v1226_v17 = vpop.f32.mrf.mxu1  ;;  %v1448_v7 = vadd.f32 %v1437_v40, %v1345_v14  ;;  %v434_v40 = vld [vmem:[%s2947_s4 + $0x10] sm:$0xff]  }
 0x1e4   : > { %v1236_v0 = vadd.f32 %v1226_v17, %v3151_v58  ;;  %v1823_v14 = vunpack.c.l.bf16 %v434_v40 }
 0x1e5   : > { %v1557_v20 = vadd.f32 %v3155_v21, %v1448_v7  ;;  %v2561_v21 = vld [vmem:[%s3246_s8] ss:$0 sm:$0xff] }
 0x1e6   : > { %v1336_v2 = vpop.f32.mrf.mxu2 }
 0x1e7   : > { %v1346_v9 = vadd.f32 %v1336_v2, %v1236_v0  ;;  %v1826_v2 = vunpack.c.h.bf16 %v436_v22 }
 0x1e8   : > { %v3158_v63 = vpop.f32.mrf.mxu0 }
 0x1ea   : > { %v1439_v13 = vpop.f32.mrf.mxu3 }
 0x1eb   : > { %v1643_v27 = vpop.f32.mrf.mxu1  ;;  %v1449_v23 = vadd.f32 %v1439_v13, %v1346_v9 }
 0x1ec   : > { %v1660_v3 = vadd.f32 %v1643_v27, %v1553_v54 }
 0x1ed   : > { %v1558_v58 = vadd.f32 %v3158_v63, %v1449_v23  ;;  %v2562_v63 = vld [vmem:[%s3247_s9] ss:$0 sm:$0xff] }
 0x1ee   : > { %v1672_v31 = vmul.f32 %v3164_v18, %v1660_v3 }
 0x1f0   : > { %v1638_v62 = vpop.f32.mrf.mxu0  ;;  %v1684_v4 = vadd.f32 %v2560_v6, %v1672_v31 }
 0x1f1   : > { %v1658_v15 = vadd.f32 %v1638_v62, %v1551_v38 }
 0x1f2   : > { %v1692_v42 = vmax.f32 %v1684_v4, 0.0  ;;  %v1820_v4 = vunpack.c.h.bf16 %v430_v33 }
 0x1f3   : > { %v1645_v34 = vpop.f32.mrf.mxu1  ;;  %v1670_v5 = vmul.f32 %v3164_v18, %v1658_v15 }
 0x1f4   : > { %v1661_v35 = vadd.f32 %v1645_v34, %v1554_v32  ;;  %v1819_v34 = vunpack.c.l.bf16 %v430_v33 }
 0x1f5   : > { %v1682_v43 = vadd.f32 %v2560_v6, %v1670_v5 }
 0x1f6   : > { %v1673_v19 = vmul.f32 %v3164_v18, %v1661_v35 }
 0x1f7   : > { %v1690_v51 = vmax.f32 %v1682_v43, 0.0 }
 0x1f8   : > { %v1640_v12 = vpop.f32.mrf.mxu0  ;;  %v1685_v36 = vadd.f32 %v2560_v6, %v1673_v19 }
 0x1f9   : > { %v1659_v37 = vadd.f32 %v1640_v12, %v1552_v45  ;;  %v432_v45 = vld [vmem:[%s2947_s4 + $0x8] sm:$0xff]  }
 0x1fa   : > { %v1693_v41 = vmax.f32 %v1685_v36, 0.0  ;;  %v1821_v39 = vunpack.c.l.bf16 %v432_v45 }
 0x1fb   : > { %v1671_v38 = vmul.f32 %v3164_v18, %v1659_v37  ;;  %v1648_v44 = vpop.f32.mrf.mxu1 }
 0x1fc   : > { %v1699_v47 = vpack.c.bf16 %v1693_v41, %v1692_v42  ;;  %v1662_v50 = vadd.f32 %v1648_v44, %v1555_v10 }
 0x1fd   : > { %v1683_v48 = vadd.f32 %v2560_v6, %v1671_v38 }
 0x1fe   : > { %v1674_v55 = vmul.f32 %v3164_v18, %v1662_v50 }
 0x1ff   : > { %v1691_v52 = vmax.f32 %v1683_v48, 0.0 }
 0x200   : > { %v1686_v1 = vadd.f32 %v2560_v6, %v1674_v55 }
 0x201   : > { %v1698_v54 = vpack.c.bf16 %v1691_v52, %v1690_v51  ;;  %v1825_v51 = vunpack.c.l.bf16 %v436_v22 }
 0x202   : > { %v1694_v10 = vmax.f32 %v1686_v1, 0.0 }
 0x203   : > { %v1650_v60 = vpop.f32.mrf.mxu1  ;;  %1774 = vmatmul.bf16.vlgmr.msra.gmra.mxu2 %v1698_v54 }
 0x204   : > { %v1663_v61 = vadd.f32 %v1650_v60, %v1556_v56 }
 0x206   : > { %v1675_v59 = vmul.f32 %v3164_v18, %v1663_v61 }
 0x208   : > { %v1687_v8 = vadd.f32 %v2560_v6, %v1675_v59 }
 0x20a   : > { %v1695_v30 = vmax.f32 %v1687_v8, 0.0 }
 0x20b   : > { %v1653_v46 = vpop.f32.mrf.mxu1 }
 0x20c   : > { %v1700_v16 = vpack.c.bf16 %v1695_v30, %v1694_v10  ;;  %v1664_v25 = vadd.f32 %v1653_v46, %v1557_v20  ;;  %v1824_v46 = vunpack.c.h.bf16 %v434_v40 }
 0x20e   : > { %v1676_v26 = vmul.f32 %v3164_v18, %v1664_v25 }
 0x210   : > { %v1688_v28 = vadd.f32 %v2560_v6, %v1676_v26 }
 0x212   : > { %v1696_v62 = vmax.f32 %v1688_v28, 0.0 }
 0x213   : > { %v1655_v17 = vpop.f32.mrf.mxu1  ;;  %1779 = vmatmul.bf16.gmra.mxu2 %v1699_v47  ;;  %v1822_v47 = vunpack.c.h.bf16 %v432_v45 }
 0x214   : > { %v1665_v27 = vadd.f32 %v1655_v17, %v1558_v58 }
 0x216   : > { %v1677_v3 = vmul.f32 %v3164_v18, %v1665_v27 }
 0x218   : > { %v1689_v57 = vadd.f32 %v2560_v6, %v1677_v3 }
 0x21a   : > { %v1697_v31 = vmax.f32 %v1689_v57, 0.0 }
 0x21c   : > { %v1701_v32 = vpack.c.bf16 %v1697_v31, %v1696_v62 }
 0x21e   : > { %1789 = vmatmul.bf16.vlgmr.msrb.gmra.mxu3 %v1701_v32 }
 0x223   : > { %1784 = vmatmul.bf16.gmra.mxu2 %v1700_v16 }
 0x286   : > { %v1775_v29 = vpop.f32.mrf.mxu2 }
 0x287   : > { %v1799_v15 = vmul.f32 %v2561_v21, %v1775_v29 }
 0x289   : > { %v1811_v18 = vadd.f32 %v2562_v63, %v1799_v15 }
 0x28b   : > { %v1827_v6 = vadd.f32 %v1819_v34, %v1811_v18 }
 0x28d   : > { %v1835_v35 = vmax.f32 %v1827_v6, 0.0 }
 0x28e   : > { %v1777_v24 = vpop.f32.mrf.mxu2 }
 0x28f   : > { %1843 = vst [vmem:[%s3191_s19] sm:$0xff] %v1835_v35  ;;  %v1800_v19 = vmul.f32 %v2561_v21, %v1777_v24 }
 0x291   : > { %v1812_v11 = vadd.f32 %v2562_v63, %v1800_v19 }
 0x293   : > { %v1828_v5 = vadd.f32 %v1820_v4, %v1812_v11 }
 0x295   : > { %v1836_v12 = vmax.f32 %v1828_v5, 0.0 }
 0x296   : > { %v1780_v36 = vpop.f32.mrf.mxu2 }
 0x297   : > { %1844 = vst [vmem:[%s3191_s19 + $0x8] sm:$0xff] %v1836_v12  ;;  %v1801_v37 = vmul.f32 %v2561_v21, %v1780_v36 }
 0x299   : > { %v1813_v42 = vadd.f32 %v2562_v63, %v1801_v37 }
 0x29b   : > { %v1829_v41 = vadd.f32 %v1821_v39, %v1813_v42 }
 0x29d   : > { %v1837_v43 = vmax.f32 %v1829_v41, 0.0 }
 0x29e   : > { %v1782_v38 = vpop.f32.mrf.mxu2 }
 0x29f   : > { %1845 = vst [vmem:[%s3191_s19 + $0x10] sm:$0xff] %v1837_v43  ;;  %v1802_v44 = vmul.f32 %v2561_v21, %v1782_v38 }
 0x2a1   : > { %v1814_v48 = vadd.f32 %v2562_v63, %v1802_v44  ;;  %v1790_v49 = vpop.f32.mrf.mxu3 }
 0x2a2   : > { %v1805_v50 = vmul.f32 %v2561_v21, %v1790_v49 }
 0x2a3   : > { %v1830_v52 = vadd.f32 %v1822_v47, %v1814_v48 }
 0x2a4   : > { %v1817_v53 = vadd.f32 %v2562_v63, %v1805_v50 }
 0x2a5   : > { %v1838_v54 = vmax.f32 %v1830_v52, 0.0 }
 0x2a6   : > { %v1833_v55 = vadd.f32 %v1825_v51, %v1817_v53  ;;  %v1785_v56 = vpop.f32.mrf.mxu2 }
 0x2a7   : > { %1846 = vst [vmem:[%s3191_s19 + $0x18] sm:$0xff] %v1838_v54  ;;  %v1803_v60 = vmul.f32 %v2561_v21, %v1785_v56 }
 0x2a8   : > { %v1841_v61 = vmax.f32 %v1833_v55, 0.0 }
 0x2a9   : > { %v1815_v0 = vadd.f32 %v2562_v63, %v1803_v60  ;;  %v1792_v59 = vpop.f32.mrf.mxu3 }
 0x2aa   : > { %1849 = vst [vmem:[%s3191_s19 + $0x30] sm:$0xff] %v1841_v61  ;;  %v1806_v1 = vmul.f32 %v2561_v21, %v1792_v59 }
 0x2ab   : > { %v1831_v7 = vadd.f32 %v1823_v14, %v1815_v0 }
 0x2ac   : > { %v1818_v8 = vadd.f32 %v2562_v63, %v1806_v1 }
 0x2ad   : > { %v1839_v9 = vmax.f32 %v1831_v7, 0.0 }
 0x2ae   : > { %v1834_v10 = vadd.f32 %v1826_v2, %v1818_v8  ;;  %v1787_v30 = vpop.f32.mrf.mxu2 }
 0x2af   : > { %1847 = vst [vmem:[%s3191_s19 + $0x20] sm:$0xff] %v1839_v9  ;;  %v1804_v13 = vmul.f32 %v2561_v21, %v1787_v30 }
 0x2b0   : > { %v1842_v20 = vmax.f32 %v1834_v10, 0.0 }
 0x2b1   : > { %v1816_v16 = vadd.f32 %v2562_v63, %v1804_v13 }
 0x2b2   : > { %1850 = vst [vmem:[%s3191_s19 + $0x38] sm:$0xff] %v1842_v20 }
 0x2b3   : > { %v1832_v23 = vadd.f32 %v1824_v46, %v1816_v16 }
 0x2b5   : > { %v1840_v25 = vmax.f32 %v1832_v23, 0.0 }
 0x2b7   : > { %1848 = vst [vmem:[%s3191_s19 + $0x28] sm:$0xff] %v1840_v25 }
 0x2b8   : > { %2710 = shalt.err (!%p2707_p10)
}
 0x2b9   : > { %s2765_s1 = smov 128   ;;  %s2766_s19 = smov 8  }
 0x2ba   : > { %2489 = dma.vmem_to_hbm [thread:$0]  (%p2913_p3), %s1865_s26, 1024, %s1867_s22, %s1852_s17, %s2765_s1, %s2765_s1, %s2766_s19  }
 0x2bb PF: > { %s1881_s24 = sand.u32 1, %s2745_s13   ;;  %p3266_p12 = scmp.ge.s32.totalorder %s2757_s16, 2 }
 0x2bc   : > { %s1882_s4 = scalar_lea.sflag [#allocation5], %s1881_s24 }
 0x2bd   : > { %p2506_p13 = pnand %p3266_p12, %p2857_p6 }
 0x2bf   : > { %p2507_p0 = pneg %p2506_p13 }
 0x2c1   : > { %2740 = dma.done.wait (%p2507_p0), %s1882_s4, 1024  }
 0x2c2   : > { %2742 = vsyncadd (%p2507_p0), %s1882_s4, 4294966272  ;;  %s3267_s11 = sld [smem:[#allocation16_spill]]  ;;  %p25_p5 = scmp.ge.s32.totalorder %s2895_s29, 4  }
 0x2c3   : > { %s3268_s13 = smov %s2749_s14  ;;  %s3269_s14 = smov %s2753_s15 }
 0x2c4   : > { %s3271_s16 = smov %s2895_s29  ;;  %27 = sbr.rel (!%p25_p5) target bundleno = 11 (0xb), region = 126 }
 0x2c8   : > { %s3270_s15 = smov %s3267_s11 }
 0x2c9   :  { %1888 = vsyncpa [#allocation4], 1 }
 0x2ca   :  { %1890 = vsyncpa [#allocation4 + $0x1], 1 }
 0x2cb   :  { %1891 = vsyncpa [#allocation7], 1 }
 0x2cc   :  { %1892 = vsyncpa [#allocation10], 1 }
 0x2cd   :  { %1893 = vsyncpa [#allocation5], 1 }
 0x2ce   :  { %1895 = vsyncpa [#allocation5 + $0x1], 1 }

</bundles_post_ra>
